<compile_context>
chip_gen: v7x
topology: tpu7x:2x2x1
jax: 0.10.0
libtpu: 0.0.40
codegen_flags: <defaults>
</compile_context>

<pallas_src>
import math

import jax
import jax.numpy as jnp
from jax import lax
from jax.experimental import pallas as pl
from jax.experimental.pallas import tpu as pltpu


# -----------------------------------------------------------------------------
# Weight packing helpers (wrapper-side, tiny tensors).
# -----------------------------------------------------------------------------
def _round8(n):
    return ((n + 7) // 8) * 8


def _reorder_gates(w, H):
    """PyTorch gate column order [i, f, g, o] -> kernel order [i, f, o, g]."""
    return jnp.concatenate([w[:, :2 * H], w[:, 3 * H:4 * H], w[:, 2 * H:3 * H]], axis=1)


def _pack_lstm_slab(lstm_params, H):
    """Pack [W_ih; W_hh; b] of every layer (gate-reordered) into one (R, 4H) f32
    slab; every segment starts on an 8-aligned row so the in-kernel static
    slices never need sublane shifts.
    Returns (slab, layout) with layout[l] = (wih_off, d_in, whh_off, b_off)."""
    H4 = 4 * H
    pieces, layout, off = [], [], 0
    for (wih, whh, b) in lstm_params:
        wih = _reorder_gates(wih.astype(jnp.float32), H)
        whh = _reorder_gates(whh.astype(jnp.float32), H)
        b = _reorder_gates(b.astype(jnp.float32), H)
        d_in = wih.shape[0]
        offs = []
        for arr in (wih, whh, b):
            r = arr.shape[0]
            rp = _round8(r)
            if rp > r:
                arr = jnp.concatenate([arr, jnp.zeros((rp - r, H4), jnp.float32)], axis=0)
            pieces.append(arr)
            offs.append(off)
            off += rp
        layout.append((offs[0], d_in, offs[1], offs[2]))
    return jnp.concatenate(pieces, axis=0), layout


def _pack_linear_slab(w_lin, b_lin, H):
    """Pack the Linear head: rows [0, H) = W (H padded to 8), row round8(H) = bias."""
    O = w_lin.shape[-1]
    rp = _round8(H)
    w = w_lin.astype(jnp.float32)
    if rp > H:
        w = jnp.concatenate([w, jnp.zeros((rp - H, O), jnp.float32)], axis=0)
    slab = jnp.concatenate([w, b_lin.astype(jnp.float32).reshape(1, O)], axis=0)
    return slab, rp


# -----------------------------------------------------------------------------
# Fused kernel factory: n_layers LSTM layers + Linear head, grid=() single call.
# -----------------------------------------------------------------------------
def _make_timegan_kernel(layout, T, B, H, O, b_lin_row):
    def kernel(x_ref, lstm_ref, lin_ref, out_ref):
        layer_in = x_ref[...]                                      # (T*B, D) value

        for (wih_off, d_in, whh_off, b_off) in layout:
            # Static, 8-aligned row slices of the packed weight slab (zero-cost).
            wih = lstm_ref[wih_off:wih_off + d_in, :]              # (d_in, 4H)
            whh = lstm_ref[whh_off:whh_off + H, :]                 # (H, 4H)
            b = lstm_ref[b_off:b_off + 1, :]                       # (1, 4H)

            # Non-recurrent input projection for ALL timesteps in one MXU matmul,
            # bias hoisted out of the time loop; kept as a value (no VMEM scratch).
            xw = jnp.dot(layer_in, wih, preferred_element_type=jnp.float32) + b  # (T*B, 4H)

            h = jnp.zeros((B, H), jnp.float32)
            c = jnp.zeros((B, H), jnp.float32)
            hs = []
            for t in range(T):                                     # static unroll (T small)
                pre = xw[t * B:(t + 1) * B, :] + jnp.dot(
                    h, whh, preferred_element_type=jnp.float32)    # (B, 4H)
                # Gate layout [i, f, o, g]: one fused sigmoid + one tanh.
                sig = jax.nn.sigmoid(pre[:, :3 * H])               # (B, 3H)
                g_g = jnp.tanh(pre[:, 3 * H:])                     # (B, H)
                i_g = sig[:, 0 * H:1 * H]
                f_g = sig[:, 1 * H:2 * H]
                o_g = sig[:, 2 * H:3 * H]
                c = f_g * c + i_g * g_g
                h = o_g * jnp.tanh(c)
                hs.append(h)
            layer_in = jnp.concatenate(hs, axis=0)                 # (T*B, H) value

        # Linear head on all timesteps at once; the ONLY store of the kernel.
        w_lin = lin_ref[0:H, :]                                    # (H, O)
        b_lin = lin_ref[b_lin_row:b_lin_row + 1, :]                # (1, O)
        out_ref[...] = (
            jnp.dot(layer_in, w_lin, preferred_element_type=jnp.float32) + b_lin
        )

    return kernel


# -----------------------------------------------------------------------------
# Wrapper: batch_first (B, T, D) -> (B, T, O), matching the PyTorch module.
# -----------------------------------------------------------------------------
def timegan_forward(x_btd, params, activation=None):
    B, T, D = x_btd.shape
    lstm_params = params["lstm"]
    n_layers = len(lstm_params)
    H = lstm_params[0][1].shape[0]              # whh: (H, 4H)
    w_lin, b_lin = params["linear"]
    O = w_lin.shape[-1]

    # Tiny layout plumbing on sub-kilobyte tensors, outside the kernel.
    x_rows = jnp.transpose(x_btd.astype(jnp.float32), (1, 0, 2)).reshape(T * B, D)
    lstm_slab, layout = _pack_lstm_slab(lstm_params, H)
    lin_slab, b_lin_row = _pack_linear_slab(w_lin, b_lin, H)

    # Advisory cost estimate (lets XLA schedule around the tiny custom call).
    flops = 0
    d_in = D
    for _ in range(n_layers):
        flops += 2 * T * B * d_in * 4 * H + 2 * T * B * H * 4 * H
        d_in = H
    flops += 2 * T * B * H * O
    transcendentals = 5 * T * B * H * n_layers
    bytes_accessed = int(4 * (x_rows.size + lstm_slab.size + lin_slab.size + T * B * O))

    # VMEM budget sanity check (v7x: 64 MiB physical, 32 MiB default scoped).
    vmem_bytes = bytes_accessed + 4 * (T * B * 4 * H + T * B * H)
    assert vmem_bytes < 32 * 1024 * 1024, (
        "TODO(synk): time-tile the input projection and set vmem_limit_bytes for "
        "large T*B / H configurations (v7x VMEM = 64 MiB).")

    vmem = pl.BlockSpec(memory_space=pltpu.MemorySpace.VMEM)
    y_rows = pl.pallas_call(
        _make_timegan_kernel(layout, T, B, H, O, b_lin_row),
        out_shape=jax.ShapeDtypeStruct((T * B, O), jnp.float32),
        in_specs=[vmem, vmem, vmem],
        out_specs=vmem,
        cost_estimate=pl.CostEstimate(
            flops=flops,
            transcendentals=transcendentals,
            bytes_accessed=bytes_accessed,
        ),
    )(x_rows, lstm_slab, lin_slab)

    y = y_rows.reshape(T, B, O).transpose(1, 0, 2)                 # back to batch_first
    if activation is None:
        return y
    return activation(y)


# -----------------------------------------------------------------------------
# Deterministic synthetic parameter init.
# Params are stored in canonical PyTorch gate order [i, f, g, o], already
# transposed to (d_in, 4H) / (H, 4H); a real checkpoint would use
# weight_ih_l{k}.T, weight_hh_l{k}.T and b = b_ih + b_hh.
# -----------------------------------------------------------------------------
def init_params(key, input_dim, hidden_dim, n_layers, out_dim):
    params = {"lstm": [], "linear": None}
    bound = 1.0 / math.sqrt(hidden_dim)
    d_in = input_dim
    for _ in range(n_layers):
        key, k1, k2, k3 = jax.random.split(key, 4)
        wih = jax.random.uniform(k1, (d_in, 4 * hidden_dim), jnp.float32, -bound, bound)
        whh = jax.random.uniform(k2, (hidden_dim, 4 * hidden_dim), jnp.float32, -bound, bound)
        b = jax.random.uniform(k3, (1, 4 * hidden_dim), jnp.float32, -bound, bound)
        params["lstm"].append((wih, whh, b))
        d_in = hidden_dim
    key, k4, k5 = jax.random.split(key, 3)
    w_lin = jax.random.uniform(k4, (hidden_dim, out_dim), jnp.float32, -bound, bound)
    b_lin = jax.random.uniform(k5, (1, out_dim), jnp.float32, -bound, bound)
    params["linear"] = (w_lin, b_lin)
    return params


# -----------------------------------------------------------------------------
# Pure-JAX reference (lax.scan, canonical [i, f, g, o] gate order).
# -----------------------------------------------------------------------------
def timegan_ref(x_btd, params, activation=None):
    h = jnp.transpose(x_btd.astype(jnp.float32), (1, 0, 2))        # (T, B, D)
    for (wih, whh, b) in params["lstm"]:
        B = h.shape[1]
        H = whh.shape[0]

        def step(carry, xt, wih=wih, whh=whh, b=b, H=H):
            hp, cp = carry
            pre = xt @ wih + hp @ whh + b
            i = jax.nn.sigmoid(pre[:, 0 * H:1 * H])
            f = jax.nn.sigmoid(pre[:, 1 * H:2 * H])
            g = jnp.tanh(pre[:, 2 * H:3 * H])
            o = jax.nn.sigmoid(pre[:, 3 * H:4 * H])
            c = f * cp + i * g
            hn = o * jnp.tanh(c)
            return (hn, c), hn

        init = (jnp.zeros((B, H), jnp.float32), jnp.zeros((B, H), jnp.float32))
        _, h = lax.scan(step, init, h)
    w_lin, b_lin = params["linear"]
    y = (h @ w_lin + b_lin).transpose(1, 0, 2)
    if activation is None:
        return y
    return activation(y)


if __name__ == "__main__":
    # Small shapes consistent with the module's forward: x (batch, seq, input_dim)
    B, T = 2, 8
    input_dim, hidden_dim, n_layers, out_dim = 5, 32, 2, 4

    key = jax.random.PRNGKey(0)
    key, kx = jax.random.split(key)
    x = jax.random.normal(kx, (B, T, input_dim), jnp.float32)

    params = init_params(key, input_dim, hidden_dim, n_layers, out_dim)

    # activation=None (module default) -> raw linear output
    y = jax.block_until_ready(timegan_forward(x, params, activation=None))
    y_ref = jax.block_until_ready(timegan_ref(x, params, activation=None))

    assert y.shape == (B, T, out_dim), y.shape
    assert jnp.allclose(y, y_ref, atol=1e-5, rtol=1e-5), float(jnp.max(jnp.abs(y - y_ref)))

    print("KERNEL_OK")
</pallas_src>

<mosaic_0001>
module attributes {stable_mosaic.version = 11 : i64} {
  func.func @kernel(%arg0: memref<16x5xf32, #tpu.memory_space<vmem>>, %arg1: memref<120x128xf32, #tpu.memory_space<vmem>>, %arg2: memref<33x4xf32, #tpu.memory_space<vmem>>, %arg3: memref<16x4xf32, #tpu.memory_space<vmem>>) attributes {dimension_semantics = [], scalar_prefetch = 0 : i64, scratch_operands = 0 : i64, tpu.core_type = #tpu.core_type<tc>} {
    %c0 = arith.constant 0 : index
    %c0_0 = arith.constant 0 : index
    %0 = vector.load %arg0[%c0, %c0_0] : memref<16x5xf32, #tpu.memory_space<vmem>>, vector<16x5xf32>
    %c0_1 = arith.constant 0 : index
    %c0_2 = arith.constant 0 : index
    %1 = vector.load %arg1[%c0_1, %c0_2] : memref<120x128xf32, #tpu.memory_space<vmem>>, vector<5x128xf32>
    %c8 = arith.constant 8 : index
    %c0_3 = arith.constant 0 : index
    %2 = vector.load %arg1[%c8, %c0_3] : memref<120x128xf32, #tpu.memory_space<vmem>>, vector<32x128xf32>
    %c40 = arith.constant 40 : index
    %c0_4 = arith.constant 0 : index
    %3 = vector.load %arg1[%c40, %c0_4] : memref<120x128xf32, #tpu.memory_space<vmem>>, vector<1x128xf32>
    %cst = arith.constant dense<0.000000e+00> : vector<16x128xf32>
    %4 = tpu.matmul %0, %1, %cst {dimension_numbers = #tpu.dot_dimension_numbers<[1], [0], [0], [1], [0, 0, 1, 1], [], []>} : vector<16x5xf32>, vector<5x128xf32>, vector<16x128xf32> -> vector<16x128xf32>
    %5 = vector.broadcast %3 : vector<1x128xf32> to vector<16x128xf32>
    %6 = arith.addf %4, %5 : vector<16x128xf32>
    %cst_5 = arith.constant 0.000000e+00 : f32
    %7 = vector.broadcast %cst_5 : f32 to vector<2x32xf32>
    %cst_6 = arith.constant 0.000000e+00 : f32
    %8 = vector.broadcast %cst_6 : f32 to vector<2x32xf32>
    %9 = vector.extract_strided_slice %6 {offsets = [0, 0], sizes = [2, 128], strides = [1, 1]} : vector<16x128xf32> to vector<2x128xf32>
    %cst_7 = arith.constant dense<0.000000e+00> : vector<2x128xf32>
    %10 = tpu.matmul %7, %2, %cst_7 {dimension_numbers = #tpu.dot_dimension_numbers<[1], [0], [0], [1], [0, 0, 1, 1], [], []>} : vector<2x32xf32>, vector<32x128xf32>, vector<2x128xf32> -> vector<2x128xf32>
    %11 = arith.addf %9, %10 : vector<2x128xf32>
    %12 = vector.extract_strided_slice %11 {offsets = [0, 0], sizes = [2, 96], strides = [1, 1]} : vector<2x128xf32> to vector<2x96xf32>
    %13 = arith.negf %12 : vector<2x96xf32>
    %14 = math.exp %13 : vector<2x96xf32>
    %cst_8 = arith.constant 1.000000e+00 : f32
    %15 = vector.broadcast %cst_8 : f32 to vector<2x96xf32>
    %16 = arith.addf %15, %14 : vector<2x96xf32>
    %17 = arith.divf %15, %16 : vector<2x96xf32>
    %18 = vector.extract_strided_slice %11 {offsets = [0, 96], sizes = [2, 32], strides = [1, 1]} : vector<2x128xf32> to vector<2x32xf32>
    %19 = math.tanh %18 : vector<2x32xf32>
    %20 = vector.extract_strided_slice %17 {offsets = [0, 0], sizes = [2, 32], strides = [1, 1]} : vector<2x96xf32> to vector<2x32xf32>
    %21 = vector.extract_strided_slice %17 {offsets = [0, 32], sizes = [2, 32], strides = [1, 1]} : vector<2x96xf32> to vector<2x32xf32>
    %22 = vector.extract_strided_slice %17 {offsets = [0, 64], sizes = [2, 32], strides = [1, 1]} : vector<2x96xf32> to vector<2x32xf32>
    %23 = arith.mulf %21, %8 : vector<2x32xf32>
    %24 = arith.mulf %20, %19 : vector<2x32xf32>
    %25 = arith.addf %23, %24 : vector<2x32xf32>
    %26 = math.tanh %25 : vector<2x32xf32>
    %27 = arith.mulf %22, %26 : vector<2x32xf32>
    %28 = vector.extract_strided_slice %6 {offsets = [2, 0], sizes = [2, 128], strides = [1, 1]} : vector<16x128xf32> to vector<2x128xf32>
    %cst_9 = arith.constant dense<0.000000e+00> : vector<2x128xf32>
    %29 = tpu.matmul %27, %2, %cst_9 {dimension_numbers = #tpu.dot_dimension_numbers<[1], [0], [0], [1], [0, 0, 1, 1], [], []>} : vector<2x32xf32>, vector<32x128xf32>, vector<2x128xf32> -> vector<2x128xf32>
    %30 = arith.addf %28, %29 : vector<2x128xf32>
    %31 = vector.extract_strided_slice %30 {offsets = [0, 0], sizes = [2, 96], strides = [1, 1]} : vector<2x128xf32> to vector<2x96xf32>
    %32 = arith.negf %31 : vector<2x96xf32>
    %33 = math.exp %32 : vector<2x96xf32>
    %cst_10 = arith.constant 1.000000e+00 : f32
    %34 = vector.broadcast %cst_10 : f32 to vector<2x96xf32>
    %35 = arith.addf %34, %33 : vector<2x96xf32>
    %36 = arith.divf %34, %35 : vector<2x96xf32>
    %37 = vector.extract_strided_slice %30 {offsets = [0, 96], sizes = [2, 32], strides = [1, 1]} : vector<2x128xf32> to vector<2x32xf32>
    %38 = math.tanh %37 : vector<2x32xf32>
    %39 = vector.extract_strided_slice %36 {offsets = [0, 0], sizes = [2, 32], strides = [1, 1]} : vector<2x96xf32> to vector<2x32xf32>
    %40 = vector.extract_strided_slice %36 {offsets = [0, 32], sizes = [2, 32], strides = [1, 1]} : vector<2x96xf32> to vector<2x32xf32>
    %41 = vector.extract_strided_slice %36 {offsets = [0, 64], sizes = [2, 32], strides = [1, 1]} : vector<2x96xf32> to vector<2x32xf32>
    %42 = arith.mulf %40, %25 : vector<2x32xf32>
    %43 = arith.mulf %39, %38 : vector<2x32xf32>
    %44 = arith.addf %42, %43 : vector<2x32xf32>
    %45 = math.tanh %44 : vector<2x32xf32>
    %46 = arith.mulf %41, %45 : vector<2x32xf32>
    %47 = vector.extract_strided_slice %6 {offsets = [4, 0], sizes = [2, 128], strides = [1, 1]} : vector<16x128xf32> to vector<2x128xf32>
    %cst_11 = arith.constant dense<0.000000e+00> : vector<2x128xf32>
    %48 = tpu.matmul %46, %2, %cst_11 {dimension_numbers = #tpu.dot_dimension_numbers<[1], [0], [0], [1], [0, 0, 1, 1], [], []>} : vector<2x32xf32>, vector<32x128xf32>, vector<2x128xf32> -> vector<2x128xf32>
    %49 = arith.addf %47, %48 : vector<2x128xf32>
    %50 = vector.extract_strided_slice %49 {offsets = [0, 0], sizes = [2, 96], strides = [1, 1]} : vector<2x128xf32> to vector<2x96xf32>
    %51 = arith.negf %50 : vector<2x96xf32>
    %52 = math.exp %51 : vector<2x96xf32>
    %cst_12 = arith.constant 1.000000e+00 : f32
    %53 = vector.broadcast %cst_12 : f32 to vector<2x96xf32>
    %54 = arith.addf %53, %52 : vector<2x96xf32>
    %55 = arith.divf %53, %54 : vector<2x96xf32>
    %56 = vector.extract_strided_slice %49 {offsets = [0, 96], sizes = [2, 32], strides = [1, 1]} : vector<2x128xf32> to vector<2x32xf32>
    %57 = math.tanh %56 : vector<2x32xf32>
    %58 = vector.extract_strided_slice %55 {offsets = [0, 0], sizes = [2, 32], strides = [1, 1]} : vector<2x96xf32> to vector<2x32xf32>
    %59 = vector.extract_strided_slice %55 {offsets = [0, 32], sizes = [2, 32], strides = [1, 1]} : vector<2x96xf32> to vector<2x32xf32>
    %60 = vector.extract_strided_slice %55 {offsets = [0, 64], sizes = [2, 32], strides = [1, 1]} : vector<2x96xf32> to vector<2x32xf32>
    %61 = arith.mulf %59, %44 : vector<2x32xf32>
    %62 = arith.mulf %58, %57 : vector<2x32xf32>
    %63 = arith.addf %61, %62 : vector<2x32xf32>
    %64 = math.tanh %63 : vector<2x32xf32>
    %65 = arith.mulf %60, %64 : vector<2x32xf32>
    %66 = vector.extract_strided_slice %6 {offsets = [6, 0], sizes = [2, 128], strides = [1, 1]} : vector<16x128xf32> to vector<2x128xf32>
    %cst_13 = arith.constant dense<0.000000e+00> : vector<2x128xf32>
    %67 = tpu.matmul %65, %2, %cst_13 {dimension_numbers = #tpu.dot_dimension_numbers<[1], [0], [0], [1], [0, 0, 1, 1], [], []>} : vector<2x32xf32>, vector<32x128xf32>, vector<2x128xf32> -> vector<2x128xf32>
    %68 = arith.addf %66, %67 : vector<2x128xf32>
    %69 = vector.extract_strided_slice %68 {offsets = [0, 0], sizes = [2, 96], strides = [1, 1]} : vector<2x128xf32> to vector<2x96xf32>
    %70 = arith.negf %69 : vector<2x96xf32>
    %71 = math.exp %70 : vector<2x96xf32>
    %cst_14 = arith.constant 1.000000e+00 : f32
    %72 = vector.broadcast %cst_14 : f32 to vector<2x96xf32>
    %73 = arith.addf %72, %71 : vector<2x96xf32>
    %74 = arith.divf %72, %73 : vector<2x96xf32>
    %75 = vector.extract_strided_slice %68 {offsets = [0, 96], sizes = [2, 32], strides = [1, 1]} : vector<2x128xf32> to vector<2x32xf32>
    %76 = math.tanh %75 : vector<2x32xf32>
    %77 = vector.extract_strided_slice %74 {offsets = [0, 0], sizes = [2, 32], strides = [1, 1]} : vector<2x96xf32> to vector<2x32xf32>
    %78 = vector.extract_strided_slice %74 {offsets = [0, 32], sizes = [2, 32], strides = [1, 1]} : vector<2x96xf32> to vector<2x32xf32>
    %79 = vector.extract_strided_slice %74 {offsets = [0, 64], sizes = [2, 32], strides = [1, 1]} : vector<2x96xf32> to vector<2x32xf32>
    %80 = arith.mulf %78, %63 : vector<2x32xf32>
    %81 = arith.mulf %77, %76 : vector<2x32xf32>
    %82 = arith.addf %80, %81 : vector<2x32xf32>
    %83 = math.tanh %82 : vector<2x32xf32>
    %84 = arith.mulf %79, %83 : vector<2x32xf32>
    %85 = vector.extract_strided_slice %6 {offsets = [8, 0], sizes = [2, 128], strides = [1, 1]} : vector<16x128xf32> to vector<2x128xf32>
    %cst_15 = arith.constant dense<0.000000e+00> : vector<2x128xf32>
    %86 = tpu.matmul %84, %2, %cst_15 {dimension_numbers = #tpu.dot_dimension_numbers<[1], [0], [0], [1], [0, 0, 1, 1], [], []>} : vector<2x32xf32>, vector<32x128xf32>, vector<2x128xf32> -> vector<2x128xf32>
    %87 = arith.addf %85, %86 : vector<2x128xf32>
    %88 = vector.extract_strided_slice %87 {offsets = [0, 0], sizes = [2, 96], strides = [1, 1]} : vector<2x128xf32> to vector<2x96xf32>
    %89 = arith.negf %88 : vector<2x96xf32>
    %90 = math.exp %89 : vector<2x96xf32>
    %cst_16 = arith.constant 1.000000e+00 : f32
    %91 = vector.broadcast %cst_16 : f32 to vector<2x96xf32>
    %92 = arith.addf %91, %90 : vector<2x96xf32>
    %93 = arith.divf %91, %92 : vector<2x96xf32>
    %94 = vector.extract_strided_slice %87 {offsets = [0, 96], sizes = [2, 32], strides = [1, 1]} : vector<2x128xf32> to vector<2x32xf32>
    %95 = math.tanh %94 : vector<2x32xf32>
    %96 = vector.extract_strided_slice %93 {offsets = [0, 0], sizes = [2, 32], strides = [1, 1]} : vector<2x96xf32> to vector<2x32xf32>
    %97 = vector.extract_strided_slice %93 {offsets = [0, 32], sizes = [2, 32], strides = [1, 1]} : vector<2x96xf32> to vector<2x32xf32>
    %98 = vector.extract_strided_slice %93 {offsets = [0, 64], sizes = [2, 32], strides = [1, 1]} : vector<2x96xf32> to vector<2x32xf32>
    %99 = arith.mulf %97, %82 : vector<2x32xf32>
    %100 = arith.mulf %96, %95 : vector<2x32xf32>
    %101 = arith.addf %99, %100 : vector<2x32xf32>
    %102 = math.tanh %101 : vector<2x32xf32>
    %103 = arith.mulf %98, %102 : vector<2x32xf32>
    %104 = vector.extract_strided_slice %6 {offsets = [10, 0], sizes = [2, 128], strides = [1, 1]} : vector<16x128xf32> to vector<2x128xf32>
    %cst_17 = arith.constant dense<0.000000e+00> : vector<2x128xf32>
    %105 = tpu.matmul %103, %2, %cst_17 {dimension_numbers = #tpu.dot_dimension_numbers<[1], [0], [0], [1], [0, 0, 1, 1], [], []>} : vector<2x32xf32>, vector<32x128xf32>, vector<2x128xf32> -> vector<2x128xf32>
    %106 = arith.addf %104, %105 : vector<2x128xf32>
    %107 = vector.extract_strided_slice %106 {offsets = [0, 0], sizes = [2, 96], strides = [1, 1]} : vector<2x128xf32> to vector<2x96xf32>
    %108 = arith.negf %107 : vector<2x96xf32>
    %109 = math.exp %108 : vector<2x96xf32>
    %cst_18 = arith.constant 1.000000e+00 : f32
    %110 = vector.broadcast %cst_18 : f32 to vector<2x96xf32>
    %111 = arith.addf %110, %109 : vector<2x96xf32>
    %112 = arith.divf %110, %111 : vector<2x96xf32>
    %113 = vector.extract_strided_slice %106 {offsets = [0, 96], sizes = [2, 32], strides = [1, 1]} : vector<2x128xf32> to vector<2x32xf32>
    %114 = math.tanh %113 : vector<2x32xf32>
    %115 = vector.extract_strided_slice %112 {offsets = [0, 0], sizes = [2, 32], strides = [1, 1]} : vector<2x96xf32> to vector<2x32xf32>
    %116 = vector.extract_strided_slice %112 {offsets = [0, 32], sizes = [2, 32], strides = [1, 1]} : vector<2x96xf32> to vector<2x32xf32>
    %117 = vector.extract_strided_slice %112 {offsets = [0, 64], sizes = [2, 32], strides = [1, 1]} : vector<2x96xf32> to vector<2x32xf32>
    %118 = arith.mulf %116, %101 : vector<2x32xf32>
    %119 = arith.mulf %115, %114 : vector<2x32xf32>
    %120 = arith.addf %118, %119 : vector<2x32xf32>
    %121 = math.tanh %120 : vector<2x32xf32>
    %122 = arith.mulf %117, %121 : vector<2x32xf32>
    %123 = vector.extract_strided_slice %6 {offsets = [12, 0], sizes = [2, 128], strides = [1, 1]} : vector<16x128xf32> to vector<2x128xf32>
    %cst_19 = arith.constant dense<0.000000e+00> : vector<2x128xf32>
    %124 = tpu.matmul %122, %2, %cst_19 {dimension_numbers = #tpu.dot_dimension_numbers<[1], [0], [0], [1], [0, 0, 1, 1], [], []>} : vector<2x32xf32>, vector<32x128xf32>, vector<2x128xf32> -> vector<2x128xf32>
    %125 = arith.addf %123, %124 : vector<2x128xf32>
    %126 = vector.extract_strided_slice %125 {offsets = [0, 0], sizes = [2, 96], strides = [1, 1]} : vector<2x128xf32> to vector<2x96xf32>
    %127 = arith.negf %126 : vector<2x96xf32>
    %128 = math.exp %127 : vector<2x96xf32>
    %cst_20 = arith.constant 1.000000e+00 : f32
    %129 = vector.broadcast %cst_20 : f32 to vector<2x96xf32>
    %130 = arith.addf %129, %128 : vector<2x96xf32>
    %131 = arith.divf %129, %130 : vector<2x96xf32>
    %132 = vector.extract_strided_slice %125 {offsets = [0, 96], sizes = [2, 32], strides = [1, 1]} : vector<2x128xf32> to vector<2x32xf32>
    %133 = math.tanh %132 : vector<2x32xf32>
    %134 = vector.extract_strided_slice %131 {offsets = [0, 0], sizes = [2, 32], strides = [1, 1]} : vector<2x96xf32> to vector<2x32xf32>
    %135 = vector.extract_strided_slice %131 {offsets = [0, 32], sizes = [2, 32], strides = [1, 1]} : vector<2x96xf32> to vector<2x32xf32>
    %136 = vector.extract_strided_slice %131 {offsets = [0, 64], sizes = [2, 32], strides = [1, 1]} : vector<2x96xf32> to vector<2x32xf32>
    %137 = arith.mulf %135, %120 : vector<2x32xf32>
    %138 = arith.mulf %134, %133 : vector<2x32xf32>
    %139 = arith.addf %137, %138 : vector<2x32xf32>
    %140 = math.tanh %139 : vector<2x32xf32>
    %141 = arith.mulf %136, %140 : vector<2x32xf32>
    %142 = vector.extract_strided_slice %6 {offsets = [14, 0], sizes = [2, 128], strides = [1, 1]} : vector<16x128xf32> to vector<2x128xf32>
    %cst_21 = arith.constant dense<0.000000e+00> : vector<2x128xf32>
    %143 = tpu.matmul %141, %2, %cst_21 {dimension_numbers = #tpu.dot_dimension_numbers<[1], [0], [0], [1], [0, 0, 1, 1], [], []>} : vector<2x32xf32>, vector<32x128xf32>, vector<2x128xf32> -> vector<2x128xf32>
    %144 = arith.addf %142, %143 : vector<2x128xf32>
    %145 = vector.extract_strided_slice %144 {offsets = [0, 0], sizes = [2, 96], strides = [1, 1]} : vector<2x128xf32> to vector<2x96xf32>
    %146 = arith.negf %145 : vector<2x96xf32>
    %147 = math.exp %146 : vector<2x96xf32>
    %cst_22 = arith.constant 1.000000e+00 : f32
    %148 = vector.broadcast %cst_22 : f32 to vector<2x96xf32>
    %149 = arith.addf %148, %147 : vector<2x96xf32>
    %150 = arith.divf %148, %149 : vector<2x96xf32>
    %151 = vector.extract_strided_slice %144 {offsets = [0, 96], sizes = [2, 32], strides = [1, 1]} : vector<2x128xf32> to vector<2x32xf32>
    %152 = math.tanh %151 : vector<2x32xf32>
    %153 = vector.extract_strided_slice %150 {offsets = [0, 0], sizes = [2, 32], strides = [1, 1]} : vector<2x96xf32> to vector<2x32xf32>
    %154 = vector.extract_strided_slice %150 {offsets = [0, 32], sizes = [2, 32], strides = [1, 1]} : vector<2x96xf32> to vector<2x32xf32>
    %155 = vector.extract_strided_slice %150 {offsets = [0, 64], sizes = [2, 32], strides = [1, 1]} : vector<2x96xf32> to vector<2x32xf32>
    %156 = arith.mulf %154, %139 : vector<2x32xf32>
    %157 = arith.mulf %153, %152 : vector<2x32xf32>
    %158 = arith.addf %156, %157 : vector<2x32xf32>
    %159 = math.tanh %158 : vector<2x32xf32>
    %160 = arith.mulf %155, %159 : vector<2x32xf32>
    %161 = tpu.concatenate %27, %46, %65, %84, %103, %122, %141, %160 in 0 : vector<2x32xf32>, vector<2x32xf32>, vector<2x32xf32>, vector<2x32xf32>, vector<2x32xf32>, vector<2x32xf32>, vector<2x32xf32>, vector<2x32xf32> -> vector<16x32xf32>
    %c48 = arith.constant 48 : index
    %c0_23 = arith.constant 0 : index
    %162 = vector.load %arg1[%c48, %c0_23] : memref<120x128xf32, #tpu.memory_space<vmem>>, vector<32x128xf32>
    %c80 = arith.constant 80 : index
    %c0_24 = arith.constant 0 : index
    %163 = vector.load %arg1[%c80, %c0_24] : memref<120x128xf32, #tpu.memory_space<vmem>>, vector<32x128xf32>
    %c112 = arith.constant 112 : index
    %c0_25 = arith.constant 0 : index
    %164 = vector.load %arg1[%c112, %c0_25] : memref<120x128xf32, #tpu.memory_space<vmem>>, vector<1x128xf32>
    %cst_26 = arith.constant dense<0.000000e+00> : vector<16x128xf32>
    %165 = tpu.matmul %161, %162, %cst_26 {dimension_numbers = #tpu.dot_dimension_numbers<[1], [0], [0], [1], [0, 0, 1, 1], [], []>} : vector<16x32xf32>, vector<32x128xf32>, vector<16x128xf32> -> vector<16x128xf32>
    %166 = vector.broadcast %164 : vector<1x128xf32> to vector<16x128xf32>
    %167 = arith.addf %165, %166 : vector<16x128xf32>
    %cst_27 = arith.constant 0.000000e+00 : f32
    %168 = vector.broadcast %cst_27 : f32 to vector<2x32xf32>
    %cst_28 = arith.constant 0.000000e+00 : f32
    %169 = vector.broadcast %cst_28 : f32 to vector<2x32xf32>
    %170 = vector.extract_strided_slice %167 {offsets = [0, 0], sizes = [2, 128], strides = [1, 1]} : vector<16x128xf32> to vector<2x128xf32>
    %cst_29 = arith.constant dense<0.000000e+00> : vector<2x128xf32>
    %171 = tpu.matmul %168, %163, %cst_29 {dimension_numbers = #tpu.dot_dimension_numbers<[1], [0], [0], [1], [0, 0, 1, 1], [], []>} : vector<2x32xf32>, vector<32x128xf32>, vector<2x128xf32> -> vector<2x128xf32>
    %172 = arith.addf %170, %171 : vector<2x128xf32>
    %173 = vector.extract_strided_slice %172 {offsets = [0, 0], sizes = [2, 96], strides = [1, 1]} : vector<2x128xf32> to vector<2x96xf32>
    %174 = arith.negf %173 : vector<2x96xf32>
    %175 = math.exp %174 : vector<2x96xf32>
    %cst_30 = arith.constant 1.000000e+00 : f32
    %176 = vector.broadcast %cst_30 : f32 to vector<2x96xf32>
    %177 = arith.addf %176, %175 : vector<2x96xf32>
    %178 = arith.divf %176, %177 : vector<2x96xf32>
    %179 = vector.extract_strided_slice %172 {offsets = [0, 96], sizes = [2, 32], strides = [1, 1]} : vector<2x128xf32> to vector<2x32xf32>
    %180 = math.tanh %179 : vector<2x32xf32>
    %181 = vector.extract_strided_slice %178 {offsets = [0, 0], sizes = [2, 32], strides = [1, 1]} : vector<2x96xf32> to vector<2x32xf32>
    %182 = vector.extract_strided_slice %178 {offsets = [0, 32], sizes = [2, 32], strides = [1, 1]} : vector<2x96xf32> to vector<2x32xf32>
    %183 = vector.extract_strided_slice %178 {offsets = [0, 64], sizes = [2, 32], strides = [1, 1]} : vector<2x96xf32> to vector<2x32xf32>
    %184 = arith.mulf %182, %169 : vector<2x32xf32>
    %185 = arith.mulf %181, %180 : vector<2x32xf32>
    %186 = arith.addf %184, %185 : vector<2x32xf32>
    %187 = math.tanh %186 : vector<2x32xf32>
    %188 = arith.mulf %183, %187 : vector<2x32xf32>
    %189 = vector.extract_strided_slice %167 {offsets = [2, 0], sizes = [2, 128], strides = [1, 1]} : vector<16x128xf32> to vector<2x128xf32>
    %cst_31 = arith.constant dense<0.000000e+00> : vector<2x128xf32>
    %190 = tpu.matmul %188, %163, %cst_31 {dimension_numbers = #tpu.dot_dimension_numbers<[1], [0], [0], [1], [0, 0, 1, 1], [], []>} : vector<2x32xf32>, vector<32x128xf32>, vector<2x128xf32> -> vector<2x128xf32>
    %191 = arith.addf %189, %190 : vector<2x128xf32>
    %192 = vector.extract_strided_slice %191 {offsets = [0, 0], sizes = [2, 96], strides = [1, 1]} : vector<2x128xf32> to vector<2x96xf32>
    %193 = arith.negf %192 : vector<2x96xf32>
    %194 = math.exp %193 : vector<2x96xf32>
    %cst_32 = arith.constant 1.000000e+00 : f32
    %195 = vector.broadcast %cst_32 : f32 to vector<2x96xf32>
    %196 = arith.addf %195, %194 : vector<2x96xf32>
    %197 = arith.divf %195, %196 : vector<2x96xf32>
    %198 = vector.extract_strided_slice %191 {offsets = [0, 96], sizes = [2, 32], strides = [1, 1]} : vector<2x128xf32> to vector<2x32xf32>
    %199 = math.tanh %198 : vector<2x32xf32>
    %200 = vector.extract_strided_slice %197 {offsets = [0, 0], sizes = [2, 32], strides = [1, 1]} : vector<2x96xf32> to vector<2x32xf32>
    %201 = vector.extract_strided_slice %197 {offsets = [0, 32], sizes = [2, 32], strides = [1, 1]} : vector<2x96xf32> to vector<2x32xf32>
    %202 = vector.extract_strided_slice %197 {offsets = [0, 64], sizes = [2, 32], strides = [1, 1]} : vector<2x96xf32> to vector<2x32xf32>
    %203 = arith.mulf %201, %186 : vector<2x32xf32>
    %204 = arith.mulf %200, %199 : vector<2x32xf32>
    %205 = arith.addf %203, %204 : vector<2x32xf32>
    %206 = math.tanh %205 : vector<2x32xf32>
    %207 = arith.mulf %202, %206 : vector<2x32xf32>
    %208 = vector.extract_strided_slice %167 {offsets = [4, 0], sizes = [2, 128], strides = [1, 1]} : vector<16x128xf32> to vector<2x128xf32>
    %cst_33 = arith.constant dense<0.000000e+00> : vector<2x128xf32>
    %209 = tpu.matmul %207, %163, %cst_33 {dimension_numbers = #tpu.dot_dimension_numbers<[1], [0], [0], [1], [0, 0, 1, 1], [], []>} : vector<2x32xf32>, vector<32x128xf32>, vector<2x128xf32> -> vector<2x128xf32>
    %210 = arith.addf %208, %209 : vector<2x128xf32>
    %211 = vector.extract_strided_slice %210 {offsets = [0, 0], sizes = [2, 96], strides = [1, 1]} : vector<2x128xf32> to vector<2x96xf32>
    %212 = arith.negf %211 : vector<2x96xf32>
    %213 = math.exp %212 : vector<2x96xf32>
    %cst_34 = arith.constant 1.000000e+00 : f32
    %214 = vector.broadcast %cst_34 : f32 to vector<2x96xf32>
    %215 = arith.addf %214, %213 : vector<2x96xf32>
    %216 = arith.divf %214, %215 : vector<2x96xf32>
    %217 = vector.extract_strided_slice %210 {offsets = [0, 96], sizes = [2, 32], strides = [1, 1]} : vector<2x128xf32> to vector<2x32xf32>
    %218 = math.tanh %217 : vector<2x32xf32>
    %219 = vector.extract_strided_slice %216 {offsets = [0, 0], sizes = [2, 32], strides = [1, 1]} : vector<2x96xf32> to vector<2x32xf32>
    %220 = vector.extract_strided_slice %216 {offsets = [0, 32], sizes = [2, 32], strides = [1, 1]} : vector<2x96xf32> to vector<2x32xf32>
    %221 = vector.extract_strided_slice %216 {offsets = [0, 64], sizes = [2, 32], strides = [1, 1]} : vector<2x96xf32> to vector<2x32xf32>
    %222 = arith.mulf %220, %205 : vector<2x32xf32>
    %223 = arith.mulf %219, %218 : vector<2x32xf32>
    %224 = arith.addf %222, %223 : vector<2x32xf32>
    %225 = math.tanh %224 : vector<2x32xf32>
    %226 = arith.mulf %221, %225 : vector<2x32xf32>
    %227 = vector.extract_strided_slice %167 {offsets = [6, 0], sizes = [2, 128], strides = [1, 1]} : vector<16x128xf32> to vector<2x128xf32>
    %cst_35 = arith.constant dense<0.000000e+00> : vector<2x128xf32>
    %228 = tpu.matmul %226, %163, %cst_35 {dimension_numbers = #tpu.dot_dimension_numbers<[1], [0], [0], [1], [0, 0, 1, 1], [], []>} : vector<2x32xf32>, vector<32x128xf32>, vector<2x128xf32> -> vector<2x128xf32>
    %229 = arith.addf %227, %228 : vector<2x128xf32>
    %230 = vector.extract_strided_slice %229 {offsets = [0, 0], sizes = [2, 96], strides = [1, 1]} : vector<2x128xf32> to vector<2x96xf32>
    %231 = arith.negf %230 : vector<2x96xf32>
    %232 = math.exp %231 : vector<2x96xf32>
    %cst_36 = arith.constant 1.000000e+00 : f32
    %233 = vector.broadcast %cst_36 : f32 to vector<2x96xf32>
    %234 = arith.addf %233, %232 : vector<2x96xf32>
    %235 = arith.divf %233, %234 : vector<2x96xf32>
    %236 = vector.extract_strided_slice %229 {offsets = [0, 96], sizes = [2, 32], strides = [1, 1]} : vector<2x128xf32> to vector<2x32xf32>
    %237 = math.tanh %236 : vector<2x32xf32>
    %238 = vector.extract_strided_slice %235 {offsets = [0, 0], sizes = [2, 32], strides = [1, 1]} : vector<2x96xf32> to vector<2x32xf32>
    %239 = vector.extract_strided_slice %235 {offsets = [0, 32], sizes = [2, 32], strides = [1, 1]} : vector<2x96xf32> to vector<2x32xf32>
    %240 = vector.extract_strided_slice %235 {offsets = [0, 64], sizes = [2, 32], strides = [1, 1]} : vector<2x96xf32> to vector<2x32xf32>
    %241 = arith.mulf %239, %224 : vector<2x32xf32>
    %242 = arith.mulf %238, %237 : vector<2x32xf32>
    %243 = arith.addf %241, %242 : vector<2x32xf32>
    %244 = math.tanh %243 : vector<2x32xf32>
    %245 = arith.mulf %240, %244 : vector<2x32xf32>
    %246 = vector.extract_strided_slice %167 {offsets = [8, 0], sizes = [2, 128], strides = [1, 1]} : vector<16x128xf32> to vector<2x128xf32>
    %cst_37 = arith.constant dense<0.000000e+00> : vector<2x128xf32>
    %247 = tpu.matmul %245, %163, %cst_37 {dimension_numbers = #tpu.dot_dimension_numbers<[1], [0], [0], [1], [0, 0, 1, 1], [], []>} : vector<2x32xf32>, vector<32x128xf32>, vector<2x128xf32> -> vector<2x128xf32>
    %248 = arith.addf %246, %247 : vector<2x128xf32>
    %249 = vector.extract_strided_slice %248 {offsets = [0, 0], sizes = [2, 96], strides = [1, 1]} : vector<2x128xf32> to vector<2x96xf32>
    %250 = arith.negf %249 : vector<2x96xf32>
    %251 = math.exp %250 : vector<2x96xf32>
    %cst_38 = arith.constant 1.000000e+00 : f32
    %252 = vector.broadcast %cst_38 : f32 to vector<2x96xf32>
    %253 = arith.addf %252, %251 : vector<2x96xf32>
    %254 = arith.divf %252, %253 : vector<2x96xf32>
    %255 = vector.extract_strided_slice %248 {offsets = [0, 96], sizes = [2, 32], strides = [1, 1]} : vector<2x128xf32> to vector<2x32xf32>
    %256 = math.tanh %255 : vector<2x32xf32>
    %257 = vector.extract_strided_slice %254 {offsets = [0, 0], sizes = [2, 32], strides = [1, 1]} : vector<2x96xf32> to vector<2x32xf32>
    %258 = vector.extract_strided_slice %254 {offsets = [0, 32], sizes = [2, 32], strides = [1, 1]} : vector<2x96xf32> to vector<2x32xf32>
    %259 = vector.extract_strided_slice %254 {offsets = [0, 64], sizes = [2, 32], strides = [1, 1]} : vector<2x96xf32> to vector<2x32xf32>
    %260 = arith.mulf %258, %243 : vector<2x32xf32>
    %261 = arith.mulf %257, %256 : vector<2x32xf32>
    %262 = arith.addf %260, %261 : vector<2x32xf32>
    %263 = math.tanh %262 : vector<2x32xf32>
    %264 = arith.mulf %259, %263 : vector<2x32xf32>
    %265 = vector.extract_strided_slice %167 {offsets = [10, 0], sizes = [2, 128], strides = [1, 1]} : vector<16x128xf32> to vector<2x128xf32>
    %cst_39 = arith.constant dense<0.000000e+00> : vector<2x128xf32>
    %266 = tpu.matmul %264, %163, %cst_39 {dimension_numbers = #tpu.dot_dimension_numbers<[1], [0], [0], [1], [0, 0, 1, 1], [], []>} : vector<2x32xf32>, vector<32x128xf32>, vector<2x128xf32> -> vector<2x128xf32>
    %267 = arith.addf %265, %266 : vector<2x128xf32>
    %268 = vector.extract_strided_slice %267 {offsets = [0, 0], sizes = [2, 96], strides = [1, 1]} : vector<2x128xf32> to vector<2x96xf32>
    %269 = arith.negf %268 : vector<2x96xf32>
    %270 = math.exp %269 : vector<2x96xf32>
    %cst_40 = arith.constant 1.000000e+00 : f32
    %271 = vector.broadcast %cst_40 : f32 to vector<2x96xf32>
    %272 = arith.addf %271, %270 : vector<2x96xf32>
    %273 = arith.divf %271, %272 : vector<2x96xf32>
    %274 = vector.extract_strided_slice %267 {offsets = [0, 96], sizes = [2, 32], strides = [1, 1]} : vector<2x128xf32> to vector<2x32xf32>
    %275 = math.tanh %274 : vector<2x32xf32>
    %276 = vector.extract_strided_slice %273 {offsets = [0, 0], sizes = [2, 32], strides = [1, 1]} : vector<2x96xf32> to vector<2x32xf32>
    %277 = vector.extract_strided_slice %273 {offsets = [0, 32], sizes = [2, 32], strides = [1, 1]} : vector<2x96xf32> to vector<2x32xf32>
    %278 = vector.extract_strided_slice %273 {offsets = [0, 64], sizes = [2, 32], strides = [1, 1]} : vector<2x96xf32> to vector<2x32xf32>
    %279 = arith.mulf %277, %262 : vector<2x32xf32>
    %280 = arith.mulf %276, %275 : vector<2x32xf32>
    %281 = arith.addf %279, %280 : vector<2x32xf32>
    %282 = math.tanh %281 : vector<2x32xf32>
    %283 = arith.mulf %278, %282 : vector<2x32xf32>
    %284 = vector.extract_strided_slice %167 {offsets = [12, 0], sizes = [2, 128], strides = [1, 1]} : vector<16x128xf32> to vector<2x128xf32>
    %cst_41 = arith.constant dense<0.000000e+00> : vector<2x128xf32>
    %285 = tpu.matmul %283, %163, %cst_41 {dimension_numbers = #tpu.dot_dimension_numbers<[1], [0], [0], [1], [0, 0, 1, 1], [], []>} : vector<2x32xf32>, vector<32x128xf32>, vector<2x128xf32> -> vector<2x128xf32>
    %286 = arith.addf %284, %285 : vector<2x128xf32>
    %287 = vector.extract_strided_slice %286 {offsets = [0, 0], sizes = [2, 96], strides = [1, 1]} : vector<2x128xf32> to vector<2x96xf32>
    %288 = arith.negf %287 : vector<2x96xf32>
    %289 = math.exp %288 : vector<2x96xf32>
    %cst_42 = arith.constant 1.000000e+00 : f32
    %290 = vector.broadcast %cst_42 : f32 to vector<2x96xf32>
    %291 = arith.addf %290, %289 : vector<2x96xf32>
    %292 = arith.divf %290, %291 : vector<2x96xf32>
    %293 = vector.extract_strided_slice %286 {offsets = [0, 96], sizes = [2, 32], strides = [1, 1]} : vector<2x128xf32> to vector<2x32xf32>
    %294 = math.tanh %293 : vector<2x32xf32>
    %295 = vector.extract_strided_slice %292 {offsets = [0, 0], sizes = [2, 32], strides = [1, 1]} : vector<2x96xf32> to vector<2x32xf32>
    %296 = vector.extract_strided_slice %292 {offsets = [0, 32], sizes = [2, 32], strides = [1, 1]} : vector<2x96xf32> to vector<2x32xf32>
    %297 = vector.extract_strided_slice %292 {offsets = [0, 64], sizes = [2, 32], strides = [1, 1]} : vector<2x96xf32> to vector<2x32xf32>
    %298 = arith.mulf %296, %281 : vector<2x32xf32>
    %299 = arith.mulf %295, %294 : vector<2x32xf32>
    %300 = arith.addf %298, %299 : vector<2x32xf32>
    %301 = math.tanh %300 : vector<2x32xf32>
    %302 = arith.mulf %297, %301 : vector<2x32xf32>
    %303 = vector.extract_strided_slice %167 {offsets = [14, 0], sizes = [2, 128], strides = [1, 1]} : vector<16x128xf32> to vector<2x128xf32>
    %cst_43 = arith.constant dense<0.000000e+00> : vector<2x128xf32>
    %304 = tpu.matmul %302, %163, %cst_43 {dimension_numbers = #tpu.dot_dimension_numbers<[1], [0], [0], [1], [0, 0, 1, 1], [], []>} : vector<2x32xf32>, vector<32x128xf32>, vector<2x128xf32> -> vector<2x128xf32>
    %305 = arith.addf %303, %304 : vector<2x128xf32>
    %306 = vector.extract_strided_slice %305 {offsets = [0, 0], sizes = [2, 96], strides = [1, 1]} : vector<2x128xf32> to vector<2x96xf32>
    %307 = arith.negf %306 : vector<2x96xf32>
    %308 = math.exp %307 : vector<2x96xf32>
    %cst_44 = arith.constant 1.000000e+00 : f32
    %309 = vector.broadcast %cst_44 : f32 to vector<2x96xf32>
    %310 = arith.addf %309, %308 : vector<2x96xf32>
    %311 = arith.divf %309, %310 : vector<2x96xf32>
    %312 = vector.extract_strided_slice %305 {offsets = [0, 96], sizes = [2, 32], strides = [1, 1]} : vector<2x128xf32> to vector<2x32xf32>
    %313 = math.tanh %312 : vector<2x32xf32>
    %314 = vector.extract_strided_slice %311 {offsets = [0, 0], sizes = [2, 32], strides = [1, 1]} : vector<2x96xf32> to vector<2x32xf32>
    %315 = vector.extract_strided_slice %311 {offsets = [0, 32], sizes = [2, 32], strides = [1, 1]} : vector<2x96xf32> to vector<2x32xf32>
    %316 = vector.extract_strided_slice %311 {offsets = [0, 64], sizes = [2, 32], strides = [1, 1]} : vector<2x96xf32> to vector<2x32xf32>
    %317 = arith.mulf %315, %300 : vector<2x32xf32>
    %318 = arith.mulf %314, %313 : vector<2x32xf32>
    %319 = arith.addf %317, %318 : vector<2x32xf32>
    %320 = math.tanh %319 : vector<2x32xf32>
    %321 = arith.mulf %316, %320 : vector<2x32xf32>
    %322 = tpu.concatenate %188, %207, %226, %245, %264, %283, %302, %321 in 0 : vector<2x32xf32>, vector<2x32xf32>, vector<2x32xf32>, vector<2x32xf32>, vector<2x32xf32>, vector<2x32xf32>, vector<2x32xf32>, vector<2x32xf32> -> vector<16x32xf32>
    %c0_45 = arith.constant 0 : index
    %c0_46 = arith.constant 0 : index
    %323 = vector.load %arg2[%c0_45, %c0_46] : memref<33x4xf32, #tpu.memory_space<vmem>>, vector<32x4xf32>
    %c32 = arith.constant 32 : index
    %c0_47 = arith.constant 0 : index
    %324 = vector.load %arg2[%c32, %c0_47] : memref<33x4xf32, #tpu.memory_space<vmem>>, vector<1x4xf32>
    %cst_48 = arith.constant dense<0.000000e+00> : vector<16x4xf32>
    %325 = tpu.matmul %322, %323, %cst_48 {dimension_numbers = #tpu.dot_dimension_numbers<[1], [0], [0], [1], [0, 0, 1, 1], [], []>} : vector<16x32xf32>, vector<32x4xf32>, vector<16x4xf32> -> vector<16x4xf32>
    %326 = vector.broadcast %324 : vector<1x4xf32> to vector<16x4xf32>
    %327 = arith.addf %325, %326 : vector<16x4xf32>
    %c0_49 = arith.constant 0 : index
    %c0_50 = arith.constant 0 : index
    %328 = vector.load %arg3[%c0_49, %c0_50] : memref<16x4xf32, #tpu.memory_space<vmem>>, vector<16x4xf32>
    tpu.vector_store %arg3[%c0_49, %c0_50], %327 {strides = array<i32>} : memref<16x4xf32, #tpu.memory_space<vmem>>, vector<16x4xf32>,
    return
  }
}

</mosaic_0001>

<bundles_post_ra>
// kernel: tpu_custom_call.1
= control target key start
LH: loop header
LB: loop body
LE: loop exit
PB: predicated region body
PF: predicated region fallthrough
CT: control target
= control target key end

     0   :  { %8 = vsyncpa [#allocation3], 0  ;;  %s2633_s12 = smov [#allocation2]   ;;  %s2948_s0 = inlined_call_operand.vmem [shape: f32[16,5], index: 0, kind: input, shape index: {}]   ;;  %s2949_s1 = inlined_call_operand.hbm [shape: f32[120,128], index: 1, kind: input, shape index: {}]   ;;  %s2950_s2 = inlined_call_operand.vmem [shape: f32[33,4], index: 2, kind: input, shape index: {}]   ;;  %s2951_s3 = inlined_call_operand.vmem [shape: f32[16,4], index: 3, kind: output, shape index: {}]  }
   0x1   :  { %s16_s13 = sshll.u32 %s2633_s12, 4  ;;  %s2609_s16 = scalar_lea.hbm %s2949_s1, 1920  ;;  %s17_s13 = int_to_ptr.vmem [resolvable:$true] %s16_s13 }
   0x2   :  { %p2610_p0 = scmp.ne.s32.totalorder %s2949_s1, %s2609_s16  ;;  %p2613_p1 = scmp.lt.u32.totalorder %s2609_s16, %s2949_s1 }
   0x4   :  { %p2615_p2 = pnand %p2613_p1, %p2610_p0 }
   0x6   :  { %2618 = shalt.err (!%p2615_p2)
}
   0x7   :  { %s2619_s21 = scalar_lea.vmem %s17_s13, 1920  ;;  %p2624_p4 = scmp.lt.s32.totalorder %s17_s13, %s17_s13 }
   0x8   :  { %p2620_p3 = scmp.ne.s32.totalorder %s17_s13, %s2619_s21  ;;  %p2625_p5 = scmp.lt.s32.totalorder %s2619_s21, %s2619_s21 }
   0xa   :  { %p2626_p6 = por %p2625_p5, %p2624_p4 }
   0xc   :  { %p2627_p7 = pnand %p2626_p6, %p2620_p3 }
   0xe   :  { %2630 = shalt.err (!%p2627_p7)
}
   0xf   :  { %s2634_s22 = smov 128   ;;  %s2635_s23 = smov 8  }
  0x10   :  { %22 = dma.hbm_to_vmem [thread:$0]  %s2949_s1, 1920, %s17_s13, [#allocation3], %s2634_s22, %s2634_s22, %s2635_s23  }
  0x11   :  { %2631 = dma.done.wait [#allocation3], 1920  }
  0x12   :  { %2632 = vsyncadd [#allocation3], 4294965376  ;;  %v2636_v0 = vmov 0.0|0.0   ;;  %vm2637_vm0 = vmmov 0   ;;  %v2638_v1 = vmov 0.0   ;;  %vm47_vm1 = vcmask 1044480  }
  0x13   :  { %2361 = vmatprep.subr.bf16.mxu1 %v2636_v0  ;;  %2171 = vmatprep.mubr.msk.f32.mxu1 %vm2637_vm0, %v2638_v1  ;;  %vm40_vm2 = vcmask 39936   ;;  %v31_v2 = vld [vmem:[#allocation2 + $0x8] sm:$0xff]  ;;  %v32_v3 = vld [vmem:[#allocation2 + $0x10] sm:$0xff]  ;;  %v30_v4 = vld [vmem:[#allocation2] sm:$0x1f]  ;;  %s2640_s29 = smov 64  }
  0x14   :  { %v2676_v5 = vpack.c.bf16 %v32_v3, %v31_v2  ;;  %2158 = vmatprep.subr.msk.mxu0 %vm47_vm1, %v30_v4  ;;  %v28_v6 = vld [vmem:[%s2948_s0] sm:$0xff]  ;;  %v29_v7 = vld [vmem:[%s2948_s0 + $0x8] sm:$0xff]  ;;  %v33_v8 = vld [vmem:[#allocation2 + $0x18] sm:$0xff]  ;;  %s2639_s0 = smov 32   ;;  %vm126_vm3 = vcmask 261120   ;;  %vm969_vm4 = vcmask 1041408  }
  0x15   :  { %2159 = vmatpush3.msk.msra.mxu0 %vm47_vm1, %v30_v4  ;;  %2160 = vmatprep.mubr.msk.f32.mxu0 %vm40_vm2, %v28_v6  ;;  %v34_v9 = vld [vmem:[#allocation2 + $0x20] sm:$0xff]  ;;  %v2023_v11 = vld [vmem:[#allocation2 + $0x28] ss:$0 sm:$0xff]  ;;  %vm971_vm5 = vcmask 1043456   ;;  %vm973_vm6 = vcmask 1045504   ;;  %vm2015_vm7 = vcmask 31744  }
  0x16   :  { %2363 = vmatpush3.bf16.msra.mxu1 %v2676_v5  ;;  %2161 = vmatmul.mubr.msk.f32.vlgmr.msra.gmra.mrb[0].mxu0 %vm40_vm2, %v29_v7  ;;  %v2685_v10 = vpack.c.bf16 %v34_v9, %v33_v8 }
  0x17   :  { %2364 = vmatprep.subr.bf16.mxu1 %v2636_v0  ;;  %2367 = vmatprep.subr.bf16.mxu0 %v2636_v0 }
  0x18   :  { %2369 = vmatpush3.bf16.msra.mxu0 %v2676_v5  ;;  %2182 = vmatprep.mubr.msk.f32.mxu0 %vm2637_vm0, %v2638_v1 }
  0x19   :  { %2370 = vmatprep.subr.bf16.mxu0 %v2636_v0 }
  0x1a   :  { %2366 = vmatpush3.bf16.msra.mxu1 %v2685_v10 }
  0x1b   :  { %2373 = vmatprep.subr.bf16.mxu1 %v2636_v0 }
  0x1c   :  { %2372 = vmatpush3.bf16.msra.mxu0 %v2685_v10 }
  0x1d   :  { %2172 = vmatmul.mubr.f32.vlgmr.msra.gmra.mrb[0].mxu1 %v2638_v1  ;;  %2379 = vmatprep.subr.bf16.mxu0 %v2636_v0 }
  0x1e   :  { %2375 = vmatpush3.bf16.msra.mxu1 %v2676_v5  ;;  %2193 = vmatprep.mubr.msk.f32.mxu1 %vm2637_vm0, %v2638_v1 }
  0x1f   :  { %2376 = vmatprep.subr.bf16.mxu1 %v2636_v0 }
  0x22   :  { %2378 = vmatpush3.bf16.msra.mxu1 %v2685_v10 }
  0x23   :  { %2385 = vmatprep.subr.bf16.mxu1 %v2636_v0 }
  0xe9   :  { %v2162_v12 = vpop.f32.mrb[0].mxu0 }
  0xea   :  { %v2704_v13 = vadd.f32 %v2162_v12, %v2023_v11  ;;  %v117_v14 = vpop.f32.mrb[1].mxu0 }
  0xeb   :  { %v2706_v15 = vadd.f32 %v2023_v11, %v117_v14 }
  0xf0   :  { %v196_v16 = vpop.f32.mrb[0].mxu1 }
  0xf1   :  { %v200_v17 = vadd.f32 %v196_v16, %v2706_v15  ;;  %v2173_v18 = vpop.f32.mrb[1].mxu1 }
  0xf3   :  { %2481 = vtanh.f32 %v200_v17  ;;  %v2027_v20 = vmul.f32 -1.442695, %v200_v17 }
  0xf5   :  { %2483 = vpow2.f32 %v2027_v20 }
  0xfd   :  { %v2482_v19 = vpop.eup %2481 }
  0xfe   :  { %210 = vrot.lane.b32.xlu0 %v2482_v19, %s2639_s0 }
  0xff   :  { %v2484_v21 = vpop.eup %2483 }
 0x100   :  { %v204_v22 = vadd.f32 1.0, %v2484_v21 }
 0x102   :  { %2485 = vrcp.f32 %v204_v22 }
 0x10c   :  { %v2486_v23 = vpop.eup %2485 }
 0x10d   :  { %v208_v26 = vmul.f32 0.0, %v2486_v23 }
 0x170   :  { %v211_v24 = vpop.permute.xlu0 %210 }
 0x171   :  { %v213_v25 = vmul.f32 %v2486_v23, %v211_v24 }
 0x173   :  { %215 = vrot.lane.b32.xlu0 %v213_v25, %s2639_s0 }
 0x1e5   :  { %v216_v27 = vpop.permute.xlu0 %215 }
 0x1e6   :  { %v218_v28 = vadd.f32 %v216_v27, %v208_v26 }
 0x1e8   :  { %2487 = vtanh.f32 %v218_v28  ;;  %v312_v44 = vrot.slane %v218_v28, 6 }
 0x1f2   :  { %v2488_v29 = vpop.eup %2487 }
 0x1f3   :  { %221 = vrot.lane.b32.xlu1 %v2488_v29, %s2639_s0 }
 0x265   :  { %v222_v30 = vpop.permute.xlu1 %221 }
 0x266   :  { %v2712_v31 = vmul.f32 %v2486_v23, %v222_v30 }
 0x268   :  { %226 = vrot.lane.b32.xlu1 %v2712_v31, %s2640_s29 }
 0x2da   :  { %v227_v32 = vpop.permute.xlu1 %226 }
 0x2db   :  { %2183 = vmatmul.mubr.msk.f32.vlgmr.msra.gmra.mrb[2].mxu0 %vm126_vm3, %v227_v32 }
 0x2dc   :  { %2381 = vmatpush3.bf16.msra.mxu0 %v2676_v5  ;;  %2204 = vmatprep.mubr.msk.f32.mxu0 %vm2637_vm0, %v2638_v1 }
 0x2dd   :  { %2382 = vmatprep.subr.bf16.mxu0 %v2636_v0 }
 0x2e0   :  { %2384 = vmatpush3.bf16.msra.mxu0 %v2685_v10 }
 0x2e1   :  { %2391 = vmatprep.subr.bf16.mxu0 %v2636_v0 }
 0x3ae   :  { %v296_v33 = vpop.f32.mrb[2].mxu0 }
 0x3af   :  { %v301_v34 = vrot.slane %v296_v33, 6  ;;  %v2184_v35 = vpop.f32.mrb[3].mxu0 }
 0x3b1   :  { %v303_v36 = vadd.f32 %v301_v34, %v2706_v15 }
 0x3b3   :  { %2489 = vtanh.f32 %v303_v36  ;;  %v2029_v38 = vmul.f32 -1.442695, %v303_v36 }
 0x3b5   :  { %2491 = vpow2.f32 %v2029_v38 }
 0x3bd   :  { %v2490_v37 = vpop.eup %2489 }
 0x3be   :  { %316 = vrot.lane.b32.xlu0 %v2490_v37, %s2639_s0 }
 0x3bf   :  { %v2492_v39 = vpop.eup %2491 }
 0x3c0   :  { %v307_v40 = vadd.f32 1.0, %v2492_v39 }
 0x3c2   :  { %2493 = vrcp.f32 %v307_v40 }
 0x3cc   :  { %v2494_v41 = vpop.eup %2493 }
 0x3cd   :  { %v314_v45 = vmul.f32 %v2494_v41, %v312_v44 }
 0x430   :  { %v317_v42 = vpop.permute.xlu0 %316 }
 0x431   :  { %v319_v43 = vmul.f32 %v2494_v41, %v317_v42 }
 0x433   :  { %321 = vrot.lane.b32.xlu1 %v319_v43, %s2639_s0 }
 0x4a5   :  { %v322_v46 = vpop.permute.xlu1 %321 }
 0x4a6   :  { %v324_v47 = vadd.f32 %v322_v46, %v314_v45 }
 0x4a8   :  { %2495 = vtanh.f32 %v324_v47  ;;  %v419_v2 = vrot.slane %v324_v47, 6 }
 0x4b2   :  { %v2496_v48 = vpop.eup %2495 }
 0x4b3   :  { %327 = vrot.lane.b32.xlu0 %v2496_v48, %s2639_s0 }
 0x525   :  { %v328_v49 = vpop.permute.xlu0 %327 }
 0x526   :  { %v330_v50 = vmul.f32 %v2494_v41, %v328_v49 }
 0x528   :  { %v332_v51 = vrot.slane %v330_v50, 2  ;;  %v970_v11 = vsel %vm969_vm4, %v2712_v31, %v330_v50 }
 0x52a   :  { %333 = vrot.lane.b32.xlu1 %v332_v51, %s2640_s29 }
 0x59c   :  { %v334_v52 = vpop.permute.xlu1 %333 }
 0x59d   :  { %2194 = vmatmul.mubr.msk.f32.vlgmr.msra.gmra.mrb[2].mxu1 %vm126_vm3, %v334_v52 }
 0x59e   :  { %2387 = vmatpush3.bf16.msra.mxu1 %v2676_v5  ;;  %2215 = vmatprep.mubr.msk.f32.mxu1 %vm2637_vm0, %v2638_v1 }
 0x59f   :  { %2388 = vmatprep.subr.bf16.mxu1 %v2636_v0 }
 0x5a2   :  { %2390 = vmatpush3.bf16.msra.mxu1 %v2685_v10 }
 0x5a3   :  { %2397 = vmatprep.subr.bf16.mxu1 %v2636_v0 }
 0x670   :  { %v403_v53 = vpop.f32.mrb[2].mxu1 }
 0x671   :  { %v408_v54 = vrot.slane %v403_v53, 4  ;;  %v2195_v55 = vpop.f32.mrb[3].mxu1 }
 0x673   :  { %v410_v56 = vadd.f32 %v408_v54, %v2706_v15 }
 0x675   :  { %2497 = vtanh.f32 %v410_v56  ;;  %v2031_v58 = vmul.f32 -1.442695, %v410_v56 }
 0x677   :  { %2499 = vpow2.f32 %v2031_v58 }
 0x67f   :  { %v2498_v57 = vpop.eup %2497 }
 0x680   :  { %423 = vrot.lane.b32.xlu0 %v2498_v57, %s2639_s0 }
 0x681   :  { %v2500_v59 = vpop.eup %2499 }
 0x682   :  { %v414_v60 = vadd.f32 1.0, %v2500_v59 }
 0x684   :  { %2501 = vrcp.f32 %v414_v60 }
 0x68e   :  { %v2502_v61 = vpop.eup %2501 }
 0x68f   :  { %v421_v3 = vmul.f32 %v2502_v61, %v419_v2 }
 0x6f2   :  { %v424_v62 = vpop.permute.xlu0 %423 }
 0x6f3   :  { %v426_v63 = vmul.f32 %v2502_v61, %v424_v62 }
 0x6f5   :  { %428 = vrot.lane.b32.xlu1 %v426_v63, %s2639_s0 }
 0x767   :  { %v429_v4 = vpop.permute.xlu1 %428 }
 0x768   :  { %v431_v6 = vadd.f32 %v429_v4, %v421_v3 }
 0x76a   :  { %2503 = vtanh.f32 %v431_v6  ;;  %v526_v28 = vrot.slane %v431_v6, 6 }
 0x774   :  { %v2504_v7 = vpop.eup %2503 }
 0x775   :  { %434 = vrot.lane.b32.xlu0 %v2504_v7, %s2639_s0 }
 0x7e7   :  { %v435_v8 = vpop.permute.xlu0 %434 }
 0x7e8   :  { %v437_v9 = vmul.f32 %v2502_v61, %v435_v8 }
 0x7ea   :  { %v439_v12 = vrot.slane %v437_v9, 4  ;;  %v972_v14 = vsel %vm971_vm5, %v970_v11, %v437_v9 }
 0x7ec   :  { %440 = vrot.lane.b32.xlu1 %v439_v12, %s2640_s29 }
 0x85e   :  { %v441_v16 = vpop.permute.xlu1 %440 }
 0x85f   :  { %2205 = vmatmul.mubr.msk.f32.vlgmr.msra.gmra.mrb[4].mxu0 %vm126_vm3, %v441_v16 }
 0x860   :  { %2393 = vmatpush3.bf16.msra.mxu0 %v2676_v5  ;;  %2226 = vmatprep.mubr.msk.f32.mxu0 %vm2637_vm0, %v2638_v1 }
 0x861   :  { %2394 = vmatprep.subr.bf16.mxu0 %v2636_v0 }
 0x864   :  { %2396 = vmatpush3.bf16.msra.mxu0 %v2685_v10 }
 0x865   :  { %2403 = vmatprep.subr.bf16.mxu0 %v2636_v0 }
 0x932   :  { %v510_v17 = vpop.f32.mrb[4].mxu0 }
 0x933   :  { %v515_v18 = vrot.slane %v510_v17, 2  ;;  %v2206_v19 = vpop.f32.mrb[5].mxu0 }
 0x935   :  { %v517_v20 = vadd.f32 %v515_v18, %v2706_v15 }
 0x937   :  { %2505 = vtanh.f32 %v517_v20  ;;  %v2033_v22 = vmul.f32 -1.442695, %v517_v20 }
 0x939   :  { %2507 = vpow2.f32 %v2033_v22 }
 0x941   :  { %v2506_v21 = vpop.eup %2505 }
 0x942   :  { %530 = vrot.lane.b32.xlu0 %v2506_v21, %s2639_s0 }
 0x943   :  { %v2508_v23 = vpop.eup %2507 }
 0x944   :  { %v521_v24 = vadd.f32 1.0, %v2508_v23 }
 0x946   :  { %2509 = vrcp.f32 %v521_v24 }
 0x950   :  { %v2510_v25 = vpop.eup %2509 }
 0x951   :  { %v528_v29 = vmul.f32 %v2510_v25, %v526_v28 }
 0x9b4   :  { %v531_v26 = vpop.permute.xlu0 %530 }
 0x9b5   :  { %v533_v27 = vmul.f32 %v2510_v25, %v531_v26 }
 0x9b7   :  { %535 = vrot.lane.b32.xlu1 %v533_v27, %s2639_s0 }
 0xa29   :  { %v536_v30 = vpop.permute.xlu1 %535 }
 0xa2a   :  { %v538_v31 = vadd.f32 %v536_v30, %v528_v29 }
 0xa2c   :  { %2511 = vtanh.f32 %v538_v31  ;;  %v630_v47 = vrot.slane %v538_v31, 6 }
 0xa36   :  { %v2512_v15 = vpop.eup %2511 }
 0xa37   :  { %541 = vrot.lane.b32.xlu0 %v2512_v15, %s2639_s0 }
 0xaa9   :  { %v542_v32 = vpop.permute.xlu0 %541 }
 0xaaa   :  { %v544_v33 = vmul.f32 %v2510_v25, %v542_v32 }
 0xaac   :  { %v546_v34 = vrot.slane %v544_v33, 6  ;;  %v2755_v35 = vsel %vm973_vm6, %v972_v14, %v544_v33 }
 0xaae   :  { %547 = vrot.lane.b32.xlu1 %v546_v34, %s2640_s29 }
 0xb20   :  { %v548_v36 = vpop.permute.xlu1 %547 }
 0xb21   :  { %2216 = vmatmul.mubr.msk.f32.vlgmr.msra.gmra.mrb[4].mxu1 %vm126_vm3, %v548_v36 }
 0xb22   :  { %2399 = vmatpush3.bf16.msra.mxu1 %v2676_v5  ;;  %2237 = vmatprep.mubr.msk.f32.mxu1 %vm2637_vm0, %v2638_v1 }
 0xb23   :  { %2400 = vmatprep.subr.bf16.mxu1 %v2636_v0 }
 0xb26   :  { %2402 = vmatpush3.bf16.msra.mxu1 %v2685_v10 }
 0xbf4   :  { %v617_v37 = vpop.f32.mrb[4].mxu1 }
 0xbf5   :  { %v621_v38 = vadd.f32 %v617_v37, %v2704_v13  ;;  %v2217_v39 = vpop.f32.mrb[5].mxu1 }
 0xbf7   :  { %2513 = vtanh.f32 %v621_v38  ;;  %v2035_v41 = vmul.f32 -1.442695, %v621_v38 }
 0xbf9   :  { %2515 = vpow2.f32 %v2035_v41 }
 0xc01   :  { %v2514_v40 = vpop.eup %2513 }
 0xc02   :  { %634 = vrot.lane.b32.xlu0 %v2514_v40, %s2639_s0 }
 0xc03   :  { %v2516_v42 = vpop.eup %2515 }
 0xc04   :  { %v625_v43 = vadd.f32 1.0, %v2516_v42 }
 0xc06   :  { %2517 = vrcp.f32 %v625_v43 }
 0xc10   :  { %v2518_v44 = vpop.eup %2517 }
 0xc11   :  { %v632_v48 = vmul.f32 %v2518_v44, %v630_v47 }
 0xc74   :  { %v635_v45 = vpop.permute.xlu0 %634 }
 0xc75   :  { %v637_v46 = vmul.f32 %v2518_v44, %v635_v45 }
 0xc77   :  { %639 = vrot.lane.b32.xlu1 %v637_v46, %s2639_s0 }
 0xce9   :  { %v640_v49 = vpop.permute.xlu1 %639 }
 0xcea   :  { %v642_v50 = vadd.f32 %v640_v49, %v632_v48 }
 0xcec   :  { %2519 = vtanh.f32 %v642_v50 }
 0xcf6   :  { %v2520_v51 = vpop.eup %2519 }
 0xcf7   :  { %645 = vrot.lane.b32.xlu0 %v2520_v51, %s2639_s0 }
 0xd69   :  { %v646_v52 = vpop.permute.xlu0 %645 }
 0xd6a   :  { %v2768_v53 = vmul.f32 %v2518_v44, %v646_v52  ;;  %v978_v52 = vld [vmem:[#allocation2 + $0x30] sm:$0xff] }
 0xd6c   :  { %650 = vrot.lane.b32.xlu1 %v2768_v53, %s2640_s29 }
 0xdde   :  { %v651_v54 = vpop.permute.xlu1 %650 }
 0xddf   :  { %2227 = vmatmul.mubr.msk.f32.vlgmr.msra.gmra.mrb[6].mxu0 %vm126_vm3, %v651_v54  ;;  %v982_v54 = vld [vmem:[#allocation2 + $0x50] sm:$0xff] }
 0xde0   :  { %2405 = vmatpush3.bf16.msra.mxu0 %v2676_v5  ;;  %2248 = vmatprep.mubr.msk.f32.mxu0 %vm2637_vm0, %v2638_v1 }
 0xde1   :  { %2406 = vmatprep.subr.bf16.mxu0 %v2636_v0 }
 0xde4   :  { %2408 = vmatpush3.bf16.msra.mxu0 %v2685_v10  ;;  %v736_v10 = vrot.slane %v642_v50, 6 }
 0xde5   :  { %2417 = vmatprep.subr.bf16.mxu0 %v2636_v0 }
 0xeb2   :  { %v720_v55 = vpop.f32.mrb[6].mxu0 }
 0xeb3   :  { %v725_v56 = vrot.slane %v720_v55, 6  ;;  %v2228_v57 = vpop.f32.mrb[7].mxu0 }
 0xeb4   :  { %v980_v57 = vld [vmem:[#allocation2 + $0x40] sm:$0xff] }
 0xeb5   :  { %v727_v58 = vadd.f32 %v725_v56, %v2704_v13  ;;  %v983_v56 = vld [vmem:[#allocation2 + $0x58] sm:$0xff] }
 0xeb7   :  { %2521 = vtanh.f32 %v727_v58  ;;  %v2037_v60 = vmul.f32 -1.442695, %v727_v58  ;;  %v981_v58 = vld [vmem:[#allocation2 + $0x48] sm:$0xff] }
 0xeb9   :  { %2523 = vpow2.f32 %v2037_v60  ;;  %v2413_v60 = vpack.c.bf16 %v981_v58, %v980_v57 }
 0xec1   :  { %v2522_v59 = vpop.eup %2521 }
 0xec2   :  { %740 = vrot.lane.b32.xlu0 %v2522_v59, %s2639_s0  ;;  %v2802_v59 = vpack.c.bf16 %v983_v56, %v982_v54 }
 0xec3   :  { %v2524_v5 = vpop.eup %2523 }
 0xec4   :  { %v731_v61 = vadd.f32 1.0, %v2524_v5  ;;  %v984_v5 = vld [vmem:[#allocation2 + $0x60] sm:$0xff] }
 0xec6   :  { %2525 = vrcp.f32 %v731_v61 }
 0xed0   :  { %v2526_v62 = vpop.eup %2525 }
 0xed1   :  { %v738_v3 = vmul.f32 %v2526_v62, %v736_v10 }
 0xf34   :  { %v741_v63 = vpop.permute.xlu0 %740 }
 0xf35   :  { %v743_v2 = vmul.f32 %v2526_v62, %v741_v63 }
 0xf37   :  { %745 = vrot.lane.b32.xlu1 %v743_v2, %s2639_s0 }
 0xfa9   :  { %v746_v4 = vpop.permute.xlu1 %745 }
 0xfaa   :  { %v748_v6 = vadd.f32 %v746_v4, %v738_v3 }
 0xfac   :  { %2527 = vtanh.f32 %v748_v6  ;;  %v843_v26 = vrot.slane %v748_v6, 6 }
 0xfb6   :  { %v2528_v7 = vpop.eup %2527 }
 0xfb7   :  { %751 = vrot.lane.b32.xlu0 %v2528_v7, %s2639_s0  ;;  %v2042_v7 = vld [vmem:[#allocation2 + $0x70] ss:$0 sm:$0xff] }
0x1029   :  { %v752_v8 = vpop.permute.xlu0 %751 }
0x102a   :  { %v754_v9 = vmul.f32 %v2526_v62, %v752_v8 }
0x102c   :  { %v756_v11 = vrot.slane %v754_v9, 2  ;;  %v975_v32 = vsel %vm969_vm4, %v2768_v53, %v754_v9  ;;  %v979_v53 = vld [vmem:[#allocation2 + $0x38] sm:$0xff] }
0x102d   :  { %v2409_v55 = vpack.c.bf16 %v979_v53, %v978_v52 }
0x102e   :  { %757 = vrot.lane.b32.xlu1 %v756_v11, %s2640_s29 }
0x102f   :  { %2410 = vmatprep.subr.bf16.mxu1 %v2409_v55 }
0x10a0   :  { %v758_v12 = vpop.permute.xlu1 %757 }
0x10a1   :  { %2238 = vmatmul.mubr.msk.f32.vlgmr.msra.gmra.mrb[6].mxu1 %vm126_vm3, %v758_v12 }
0x10a2   :  { %2412 = vmatpush3.bf16.msra.mxu1 %v2409_v55 }
0x10a3   :  { %2414 = vmatprep.subr.bf16.mxu1 %v2413_v60 }
0x10a6   :  { %2416 = vmatpush3.bf16.msra.mxu1 %v2413_v60 }
0x10a7   :  { %2423 = vmatprep.subr.bf16.mxu1 %v2636_v0 }
0x1174   :  { %v827_v14 = vpop.f32.mrb[6].mxu1 }
0x1175   :  { %v832_v16 = vrot.slane %v827_v14, 4  ;;  %v2239_v17 = vpop.f32.mrb[7].mxu1 }
0x1177   :  { %v834_v18 = vadd.f32 %v832_v16, %v2704_v13 }
0x1179   :  { %2529 = vtanh.f32 %v834_v18  ;;  %v2039_v20 = vmul.f32 -1.442695, %v834_v18 }
0x117b   :  { %2531 = vpow2.f32 %v2039_v20 }
0x1183   :  { %v2530_v19 = vpop.eup %2529 }
0x1184   :  { %847 = vrot.lane.b32.xlu0 %v2530_v19, %s2639_s0 }
0x1185   :  { %v2532_v21 = vpop.eup %2531 }
0x1186   :  { %v838_v22 = vadd.f32 1.0, %v2532_v21 }
0x1188   :  { %2533 = vrcp.f32 %v838_v22 }
0x1192   :  { %v2534_v23 = vpop.eup %2533 }
0x1193   :  { %v845_v27 = vmul.f32 %v2534_v23, %v843_v26 }
0x11f6   :  { %v848_v24 = vpop.permute.xlu0 %847 }
0x11f7   :  { %v850_v25 = vmul.f32 %v2534_v23, %v848_v24 }
0x11f9   :  { %852 = vrot.lane.b32.xlu1 %v850_v25, %s2639_s0 }
0x126b   :  { %v853_v28 = vpop.permute.xlu1 %852 }
0x126c   :  { %v855_v29 = vadd.f32 %v853_v28, %v845_v27 }
0x126e   :  { %2535 = vtanh.f32 %v855_v29  ;;  %v950_v48 = vrot.slane %v855_v29, 6 }
0x1278   :  { %v2536_v30 = vpop.eup %2535 }
0x1279   :  { %858 = vrot.lane.b32.xlu0 %v2536_v30, %s2639_s0 }
0x12eb   :  { %v859_v31 = vpop.permute.xlu0 %858 }
0x12ec   :  { %v861_v15 = vmul.f32 %v2534_v23, %v859_v31 }
0x12ee   :  { %v863_v33 = vrot.slane %v861_v15, 4  ;;  %v976_v34 = vsel %vm971_vm5, %v975_v32, %v861_v15 }
0x12f0   :  { %864 = vrot.lane.b32.xlu1 %v863_v33, %s2640_s29 }
0x1362   :  { %v865_v36 = vpop.permute.xlu1 %864 }
0x1363   :  { %2249 = vmatmul.mubr.msk.f32.vlgmr.msra.gmra.mrb[8].mxu0 %vm126_vm3, %v865_v36 }
0x1364   :  { %2270 = vmatprep.mubr.msk.f32.mxu0 %vm2637_vm0, %v2638_v1  ;;  %2419 = vmatpush3.bf16.msra.mxu0 %v2802_v59 }
0x1365   :  { %2420 = vmatprep.subr.bf16.mxu0 %v2636_v0 }
0x1436   :  { %v934_v37 = vpop.f32.mrb[8].mxu0 }
0x1437   :  { %v939_v38 = vrot.slane %v934_v37, 2  ;;  %v2250_v39 = vpop.f32.mrb[9].mxu0 }
0x1439   :  { %v941_v40 = vadd.f32 %v939_v38, %v2704_v13 }
0x143b   :  { %2537 = vtanh.f32 %v941_v40  ;;  %v2041_v42 = vmul.f32 -1.442695, %v941_v40 }
0x143d   :  { %2539 = vpow2.f32 %v2041_v42 }
0x1445   :  { %v2538_v41 = vpop.eup %2537 }
0x1446   :  { %954 = vrot.lane.b32.xlu0 %v2538_v41, %s2639_s0 }
0x1447   :  { %v2540_v43 = vpop.eup %2539 }
0x1448   :  { %v945_v44 = vadd.f32 1.0, %v2540_v43 }
0x144a   :  { %2541 = vrcp.f32 %v945_v44 }
0x1454   :  { %v2542_v45 = vpop.eup %2541 }
0x1455   :  { %v952_v49 = vmul.f32 %v2542_v45, %v950_v48 }
0x14b8   :  { %v955_v46 = vpop.permute.xlu0 %954 }
0x14b9   :  { %v957_v47 = vmul.f32 %v2542_v45, %v955_v46 }
0x14bb   :  { %959 = vrot.lane.b32.xlu1 %v957_v47, %s2639_s0 }
0x14bf   :  { %993 = vrot.lane.b32.xlu1 %v2755_v35, %s2640_s29  ;;  %v985_v35 = vld [vmem:[#allocation2 + $0x68] sm:$0xff] }
0x14c0   :  { %v2805_v61 = vpack.c.bf16 %v985_v35, %v984_v5 }
0x14c2   :  { %2422 = vmatpush3.bf16.msra.mxu0 %v2805_v61 }
0x14c3   :  { %2429 = vmatprep.subr.bf16.mxu0 %v2636_v0 }
0x14c5   :  { %2271 = vmatmul.mubr.f32.vlgmr.msra.gmra.mrb[10].mxu0 %v2638_v1 }
0x14c6   :  { %2431 = vmatpush3.bf16.msra.mxu0 %v2802_v59  ;;  %2292 = vmatprep.mubr.msk.f32.mxu0 %vm2637_vm0, %v2638_v1 }
0x14c7   :  { %2432 = vmatprep.subr.bf16.mxu0 %v2636_v0 }
0x14ca   :  { %2434 = vmatpush3.bf16.msra.mxu0 %v2805_v61 }
0x14cb   :  { %2441 = vmatprep.subr.bf16.mxu0 %v2636_v0 }
0x152d   :  { %v960_v13 = vpop.permute.xlu1 %959 }
0x152e   :  { %v962_v50 = vadd.f32 %v960_v13, %v952_v49 }
0x1530   :  { %2543 = vtanh.f32 %v962_v50 }
0x1531   :  { %v994_v51 = vpop.permute.xlu1 %993 }
0x1532   :  { %2259 = vmatprep.mubr.msk.f32.mxu1 %vm126_vm3, %v994_v51 }
0x153a   :  { %v2544_v62 = vpop.eup %2543 }
0x153b   :  { %965 = vrot.lane.b32.xlu0 %v2544_v62, %s2639_s0 }
0x1598   :  { %v1142_v4 = vpop.f32.mrb[10].mxu0 }
0x1599   :  { %v2272_v6 = vpop.f32.mrb[11].mxu0 }
0x15ad   :  { %v966_v63 = vpop.permute.xlu0 %965 }
0x15ae   :  { %v968_v2 = vmul.f32 %v2542_v45, %v966_v63 }
0x15b0   :  { %v977_v10 = vsel %vm973_vm6, %v976_v34, %v968_v2 }
0x15b1   :  { %995 = vrot.lane.b32.xlu0 %v977_v10, %s2640_s29 }
0x1623   :  { %v996_v3 = vpop.permute.xlu0 %995 }
0x1624   :  { %2260 = vmatmul.mubr.msk.f32.vlgmr.msra.gmra.mrb[8].mxu1 %vm126_vm3, %v996_v3 }
0x1625   :  { %2425 = vmatpush3.bf16.msra.mxu1 %v2802_v59  ;;  %2281 = vmatprep.mubr.msk.f32.mxu1 %vm2637_vm0, %v2638_v1 }
0x1626   :  { %2426 = vmatprep.subr.bf16.mxu1 %v2636_v0 }
0x1629   :  { %2428 = vmatpush3.bf16.msra.mxu1 %v2805_v61 }
0x162a   :  { %2435 = vmatprep.subr.bf16.mxu1 %v2636_v0 }
0x16f7   :  { %v2261_v8 = vpop.f32.mrb[8].mxu1 }
0x16f8   :  { %v2828_v9 = vadd.f32 %v2261_v8, %v2042_v7  ;;  %v1067_v11 = vpop.f32.mrb[9].mxu1 }
0x16f9   :  { %v2830_v12 = vadd.f32 %v2042_v7, %v1067_v11 }
0x16fb   :  { %v1146_v14 = vadd.f32 %v1142_v4, %v2830_v12 }
0x16fd   :  { %2545 = vtanh.f32 %v1146_v14  ;;  %v2045_v17 = vmul.f32 -1.442695, %v1146_v14 }
0x16ff   :  { %2547 = vpow2.f32 %v2045_v17 }
0x1707   :  { %v2546_v16 = vpop.eup %2545 }
0x1708   :  { %1156 = vrot.lane.b32.xlu1 %v2546_v16, %s2639_s0 }
0x1709   :  { %v2548_v18 = vpop.eup %2547 }
0x170a   :  { %v1150_v19 = vadd.f32 1.0, %v2548_v18 }
0x170c   :  { %2549 = vrcp.f32 %v1150_v19 }
0x1716   :  { %v2550_v20 = vpop.eup %2549 }
0x1717   :  { %v1154_v23 = vmul.f32 0.0, %v2550_v20 }
0x177a   :  { %v1157_v21 = vpop.permute.xlu1 %1156 }
0x177b   :  { %v1159_v22 = vmul.f32 %v2550_v20, %v1157_v21 }
0x177d   :  { %1161 = vrot.lane.b32.xlu0 %v1159_v22, %s2639_s0 }
0x17ef   :  { %v1162_v24 = vpop.permute.xlu0 %1161 }
0x17f0   :  { %v1164_v25 = vadd.f32 %v1162_v24, %v1154_v23 }
0x17f2   :  { %2551 = vtanh.f32 %v1164_v25  ;;  %v1258_v41 = vrot.slane %v1164_v25, 6 }
0x17fc   :  { %v2552_v26 = vpop.eup %2551 }
0x17fd   :  { %1167 = vrot.lane.b32.xlu1 %v2552_v26, %s2639_s0 }
0x186f   :  { %v1168_v27 = vpop.permute.xlu1 %1167 }
0x1870   :  { %v2836_v28 = vmul.f32 %v2550_v20, %v1168_v27 }
0x1872   :  { %1172 = vrot.lane.b32.xlu0 %v2836_v28, %s2640_s29 }
0x18e4   :  { %v1173_v29 = vpop.permute.xlu0 %1172 }
0x18e5   :  { %2282 = vmatmul.mubr.msk.f32.vlgmr.msra.gmra.mrb[10].mxu1 %vm126_vm3, %v1173_v29 }
0x18e6   :  { %2437 = vmatpush3.bf16.msra.mxu1 %v2802_v59  ;;  %2303 = vmatprep.mubr.msk.f32.mxu1 %vm2637_vm0, %v2638_v1 }
0x18e7   :  { %2438 = vmatprep.subr.bf16.mxu1 %v2636_v0 }
0x18ea   :  { %2440 = vmatpush3.bf16.msra.mxu1 %v2805_v61 }
0x18eb   :  { %2447 = vmatprep.subr.bf16.mxu1 %v2636_v0 }
0x19b8   :  { %v1242_v30 = vpop.f32.mrb[10].mxu1 }
0x19b9   :  { %v1247_v31 = vrot.slane %v1242_v30, 6  ;;  %v2283_v15 = vpop.f32.mrb[11].mxu1 }
0x19bb   :  { %v1249_v32 = vadd.f32 %v1247_v31, %v2830_v12 }
0x19bd   :  { %2553 = vtanh.f32 %v1249_v32  ;;  %v2047_v34 = vmul.f32 -1.442695, %v1249_v32 }
0x19bf   :  { %2555 = vpow2.f32 %v2047_v34 }
0x19c7   :  { %v2554_v33 = vpop.eup %2553 }
0x19c8   :  { %1262 = vrot.lane.b32.xlu1 %v2554_v33, %s2639_s0 }
0x19c9   :  { %v2556_v36 = vpop.eup %2555 }
0x19ca   :  { %v1253_v37 = vadd.f32 1.0, %v2556_v36 }
0x19cc   :  { %2557 = vrcp.f32 %v1253_v37 }
0x19d6   :  { %v2558_v38 = vpop.eup %2557 }
0x19d7   :  { %v1260_v42 = vmul.f32 %v2558_v38, %v1258_v41 }
0x1a3a   :  { %v1263_v39 = vpop.permute.xlu1 %1262 }
0x1a3b   :  { %v1265_v40 = vmul.f32 %v2558_v38, %v1263_v39 }
0x1a3d   :  { %1267 = vrot.lane.b32.xlu0 %v1265_v40, %s2639_s0 }
0x1aaf   :  { %v1268_v43 = vpop.permute.xlu0 %1267 }
0x1ab0   :  { %v1270_v44 = vadd.f32 %v1268_v43, %v1260_v42 }
0x1ab2   :  { %2559 = vtanh.f32 %v1270_v44  ;;  %v1365_v5 = vrot.slane %v1270_v44, 6 }
0x1abc   :  { %v2560_v45 = vpop.eup %2559 }
0x1abd   :  { %1273 = vrot.lane.b32.xlu1 %v2560_v45, %s2639_s0 }
0x1b2f   :  { %v1274_v46 = vpop.permute.xlu1 %1273 }
0x1b30   :  { %v1276_v47 = vmul.f32 %v2558_v38, %v1274_v46 }
0x1b32   :  { %v1278_v48 = vrot.slane %v1276_v47, 2  ;;  %v1915_v4 = vsel %vm969_vm4, %v2836_v28, %v1276_v47 }
0x1b34   :  { %1279 = vrot.lane.b32.xlu0 %v1278_v48, %s2640_s29 }
0x1ba6   :  { %v1280_v49 = vpop.permute.xlu0 %1279 }
0x1ba7   :  { %2293 = vmatmul.mubr.msk.f32.vlgmr.msra.gmra.mrb[12].mxu0 %vm126_vm3, %v1280_v49 }
0x1ba8   :  { %2443 = vmatpush3.bf16.msra.mxu0 %v2802_v59  ;;  %2314 = vmatprep.mubr.msk.f32.mxu0 %vm2637_vm0, %v2638_v1 }
0x1ba9   :  { %2444 = vmatprep.subr.bf16.mxu0 %v2636_v0 }
0x1bac   :  { %2446 = vmatpush3.bf16.msra.mxu0 %v2805_v61 }
0x1bad   :  { %2453 = vmatprep.subr.bf16.mxu0 %v2636_v0 }
0x1c7a   :  { %v1349_v13 = vpop.f32.mrb[12].mxu0 }
0x1c7b   :  { %v1354_v50 = vrot.slane %v1349_v13, 4  ;;  %v2294_v51 = vpop.f32.mrb[13].mxu0 }
0x1c7d   :  { %v1356_v52 = vadd.f32 %v1354_v50, %v2830_v12 }
0x1c7f   :  { %2561 = vtanh.f32 %v1356_v52  ;;  %v2049_v54 = vmul.f32 -1.442695, %v1356_v52 }
0x1c81   :  { %2563 = vpow2.f32 %v2049_v54 }
0x1c89   :  { %v2562_v53 = vpop.eup %2561 }
0x1c8a   :  { %1369 = vrot.lane.b32.xlu1 %v2562_v53, %s2639_s0 }
0x1c8b   :  { %v2564_v55 = vpop.eup %2563 }
0x1c8c   :  { %v1360_v56 = vadd.f32 1.0, %v2564_v55 }
0x1c8e   :  { %2565 = vrcp.f32 %v1360_v56 }
0x1c98   :  { %v2566_v57 = vpop.eup %2565 }
0x1c99   :  { %v1367_v35 = vmul.f32 %v2566_v57, %v1365_v5 }
0x1cfc   :  { %v1370_v58 = vpop.permute.xlu1 %1369 }
0x1cfd   :  { %v1372_v60 = vmul.f32 %v2566_v57, %v1370_v58 }
0x1cff   :  { %1374 = vrot.lane.b32.xlu0 %v1372_v60, %s2639_s0 }
0x1d71   :  { %v1375_v62 = vpop.permute.xlu0 %1374 }
0x1d72   :  { %v1377_v63 = vadd.f32 %v1375_v62, %v1367_v35 }
0x1d74   :  { %2567 = vtanh.f32 %v1377_v63  ;;  %v1472_v25 = vrot.slane %v1377_v63, 6 }
0x1d7e   :  { %v2568_v2 = vpop.eup %2567 }
0x1d7f   :  { %1380 = vrot.lane.b32.xlu1 %v2568_v2, %s2639_s0 }
0x1df1   :  { %v1381_v10 = vpop.permute.xlu1 %1380 }
0x1df2   :  { %v1383_v3 = vmul.f32 %v2566_v57, %v1381_v10 }
0x1df4   :  { %v1385_v6 = vrot.slane %v1383_v3, 4  ;;  %v1916_v7 = vsel %vm971_vm5, %v1915_v4, %v1383_v3 }
0x1df6   :  { %1386 = vrot.lane.b32.xlu0 %v1385_v6, %s2640_s29 }
0x1e68   :  { %v1387_v8 = vpop.permute.xlu0 %1386 }
0x1e69   :  { %2304 = vmatmul.mubr.msk.f32.vlgmr.msra.gmra.mrb[12].mxu1 %vm126_vm3, %v1387_v8 }
0x1e6a   :  { %2449 = vmatpush3.bf16.msra.mxu1 %v2802_v59  ;;  %2325 = vmatprep.mubr.msk.f32.mxu1 %vm2637_vm0, %v2638_v1 }
0x1e6b   :  { %2450 = vmatprep.subr.bf16.mxu1 %v2636_v0 }
0x1e6e   :  { %2452 = vmatpush3.bf16.msra.mxu1 %v2805_v61 }
0x1e6f   :  { %2459 = vmatprep.subr.bf16.mxu1 %v2636_v0 }
0x1f3c   :  { %v1456_v11 = vpop.f32.mrb[12].mxu1 }
0x1f3d   :  { %v1461_v14 = vrot.slane %v1456_v11, 2  ;;  %v2305_v16 = vpop.f32.mrb[13].mxu1 }
0x1f3f   :  { %v1463_v17 = vadd.f32 %v1461_v14, %v2830_v12 }
0x1f41   :  { %2569 = vtanh.f32 %v1463_v17  ;;  %v2051_v19 = vmul.f32 -1.442695, %v1463_v17 }
0x1f43   :  { %2571 = vpow2.f32 %v2051_v19 }
0x1f4b   :  { %v2570_v18 = vpop.eup %2569 }
0x1f4c   :  { %1476 = vrot.lane.b32.xlu1 %v2570_v18, %s2639_s0 }
0x1f4d   :  { %v2572_v20 = vpop.eup %2571 }
0x1f4e   :  { %v1467_v21 = vadd.f32 1.0, %v2572_v20 }
0x1f50   :  { %2573 = vrcp.f32 %v1467_v21 }
0x1f5a   :  { %v2574_v22 = vpop.eup %2573 }
0x1f5b   :  { %v1474_v26 = vmul.f32 %v2574_v22, %v1472_v25 }
0x1fbe   :  { %v1477_v23 = vpop.permute.xlu1 %1476 }
0x1fbf   :  { %v1479_v24 = vmul.f32 %v2574_v22, %v1477_v23 }
0x1fc1   :  { %1481 = vrot.lane.b32.xlu0 %v1479_v24, %s2639_s0 }
0x2033   :  { %v1482_v27 = vpop.permute.xlu0 %1481 }
0x2034   :  { %v1484_v28 = vadd.f32 %v1482_v27, %v1474_v26 }
0x2036   :  { %2575 = vtanh.f32 %v1484_v28  ;;  %v1576_v44 = vrot.slane %v1484_v28, 6 }
0x2040   :  { %v2576_v12 = vpop.eup %2575 }
0x2041   :  { %1487 = vrot.lane.b32.xlu1 %v2576_v12, %s2639_s0 }
0x20b3   :  { %v1488_v29 = vpop.permute.xlu1 %1487 }
0x20b4   :  { %v1490_v30 = vmul.f32 %v2574_v22, %v1488_v29 }
0x20b6   :  { %v1492_v31 = vrot.slane %v1490_v30, 6  ;;  %v2879_v15 = vsel %vm973_vm6, %v1916_v7, %v1490_v30 }
0x20b8   :  { %1493 = vrot.lane.b32.xlu0 %v1492_v31, %s2640_s29 }
0x212a   :  { %v1494_v32 = vpop.permute.xlu0 %1493 }
0x212b   :  { %2315 = vmatmul.mubr.msk.f32.vlgmr.msra.gmra.mrb[14].mxu0 %vm126_vm3, %v1494_v32 }
0x212c   :  { %2455 = vmatpush3.bf16.msra.mxu0 %v2802_v59  ;;  %2336 = vmatprep.mubr.msk.f32.mxu0 %vm2637_vm0, %v2638_v1 }
0x212d   :  { %2456 = vmatprep.subr.bf16.mxu0 %v2636_v0 }
0x2130   :  { %2458 = vmatpush3.bf16.msra.mxu0 %v2805_v61 }
0x21fe   :  { %v1563_v33 = vpop.f32.mrb[14].mxu0 }
0x21ff   :  { %v1567_v34 = vadd.f32 %v1563_v33, %v2828_v9  ;;  %v2316_v36 = vpop.f32.mrb[15].mxu0 }
0x2201   :  { %2577 = vtanh.f32 %v1567_v34  ;;  %v2053_v38 = vmul.f32 -1.442695, %v1567_v34 }
0x2203   :  { %2579 = vpow2.f32 %v2053_v38 }
0x220b   :  { %v2578_v37 = vpop.eup %2577 }
0x220c   :  { %1580 = vrot.lane.b32.xlu1 %v2578_v37, %s2639_s0 }
0x220d   :  { %v2580_v39 = vpop.eup %2579 }
0x220e   :  { %v1571_v40 = vadd.f32 1.0, %v2580_v39 }
0x2210   :  { %2581 = vrcp.f32 %v1571_v40 }
0x221a   :  { %v2582_v41 = vpop.eup %2581 }
0x221b   :  { %v1578_v45 = vmul.f32 %v2582_v41, %v1576_v44 }
0x227e   :  { %v1581_v42 = vpop.permute.xlu1 %1580 }
0x227f   :  { %v1583_v43 = vmul.f32 %v2582_v41, %v1581_v42 }
0x2281   :  { %1585 = vrot.lane.b32.xlu0 %v1583_v43, %s2639_s0 }
0x22f3   :  { %v1586_v46 = vpop.permute.xlu0 %1585 }
0x22f4   :  { %v1588_v47 = vadd.f32 %v1586_v46, %v1578_v45 }
0x22f6   :  { %2583 = vtanh.f32 %v1588_v47 }
0x2300   :  { %v2584_v48 = vpop.eup %2583 }
0x2301   :  { %1591 = vrot.lane.b32.xlu1 %v2584_v48, %s2639_s0  ;;  %v1922_v48 = vld [vmem:[%s2950_s2 + $0x8] sm:$0xff] }
0x2373   :  { %v1592_v49 = vpop.permute.xlu1 %1591 }
0x2374   :  { %v2892_v13 = vmul.f32 %v2582_v41, %v1592_v49  ;;  %v1923_v49 = vld [vmem:[%s2950_s2 + $0x10] sm:$0xff] }
0x2376   :  { %1596 = vrot.lane.b32.xlu0 %v2892_v13, %s2640_s29 }
0x23e8   :  { %v1597_v50 = vpop.permute.xlu0 %1596 }
0x23e9   :  { %2326 = vmatmul.mubr.msk.f32.vlgmr.msra.gmra.mrb[14].mxu1 %vm126_vm3, %v1597_v50 }
0x23ea   :  { %2461 = vmatpush3.bf16.msra.mxu1 %v2802_v59  ;;  %2347 = vmatprep.mubr.msk.f32.mxu1 %vm2637_vm0, %v2638_v1 }
0x23eb   :  { %2462 = vmatprep.subr.bf16.mxu1 %v2636_v0  ;;  %v1682_v0 = vrot.slane %v1588_v47, 6  ;;  %v1921_v47 = vld [vmem:[%s2950_s2] sm:$0xff] }
0x23ee   :  { %2464 = vmatpush3.bf16.msra.mxu1 %v2805_v61 }
0x24bc   :  { %v1666_v51 = vpop.f32.mrb[14].mxu1 }
0x24bd   :  { %v1671_v52 = vrot.slane %v1666_v51, 6  ;;  %v2327_v53 = vpop.f32.mrb[15].mxu1 }
0x24bf   :  { %v1673_v54 = vadd.f32 %v1671_v52, %v2828_v9 }
0x24c1   :  { %2585 = vtanh.f32 %v1673_v54  ;;  %v2055_v56 = vmul.f32 -1.442695, %v1673_v54 }
0x24c3   :  { %2587 = vpow2.f32 %v2055_v56  ;;  %v2060_v56 = vld [vmem:[%s2950_s2 + $0x20] ss:$0 sm:$0xff] }
0x24cb   :  { %v2586_v55 = vpop.eup %2585 }
0x24cc   :  { %1686 = vrot.lane.b32.xlu1 %v2586_v55, %s2639_s0 }
0x24cd   :  { %v2588_v57 = vpop.eup %2587 }
0x24ce   :  { %v1677_v59 = vadd.f32 1.0, %v2588_v57 }
0x24d0   :  { %2589 = vrcp.f32 %v1677_v59 }
0x24da   :  { %v2590_v58 = vpop.eup %2589 }
0x24db   :  { %v1684_v61 = vmul.f32 %v2590_v58, %v1682_v0 }
0x253e   :  { %v1687_v1 = vpop.permute.xlu1 %1686 }
0x253f   :  { %v1689_v60 = vmul.f32 %v2590_v58, %v1687_v1 }
0x2541   :  { %1691 = vrot.lane.b32.xlu0 %v1689_v60, %s2639_s0 }
0x25b3   :  { %v1692_v5 = vpop.permute.xlu0 %1691 }
0x25b4   :  { %v1694_v35 = vadd.f32 %v1692_v5, %v1684_v61 }
0x25b6   :  { %2591 = vtanh.f32 %v1694_v35  ;;  %v1789_v21 = vrot.slane %v1694_v35, 6 }
0x25c0   :  { %v2592_v62 = vpop.eup %2591 }
0x25c1   :  { %1697 = vrot.lane.b32.xlu1 %v2592_v62, %s2639_s0 }
0x2633   :  { %v1698_v63 = vpop.permute.xlu1 %1697 }
0x2634   :  { %v1700_v2 = vmul.f32 %v2590_v58, %v1698_v63 }
0x2636   :  { %v1702_v10 = vrot.slane %v1700_v2, 2  ;;  %v1918_v28 = vsel %vm969_vm4, %v2892_v13, %v1700_v2  ;;  %v1924_v13 = vld [vmem:[%s2950_s2 + $0x18] sm:$0xff] }
0x2637   :  { %v2469_v50 = vpack.c.bf16 %v1924_v13, %v1923_v49 }
0x2638   :  { %1703 = vrot.lane.b32.xlu0 %v1702_v10, %s2640_s29 }
0x26aa   :  { %v1704_v3 = vpop.permute.xlu0 %1703 }
0x26ab   :  { %2337 = vmatmul.mubr.msk.f32.vlgmr.msra.gmra.mrb[16].mxu0 %vm126_vm3, %v1704_v3 }
0x277e   :  { %v1773_v4 = vpop.f32.mrb[16].mxu0 }
0x277f   :  { %v1778_v6 = vrot.slane %v1773_v4, 4  ;;  %v2338_v7 = vpop.f32.mrb[17].mxu0 }
0x2781   :  { %v1780_v8 = vadd.f32 %v1778_v6, %v2828_v9 }
0x2783   :  { %2593 = vtanh.f32 %v1780_v8  ;;  %v2057_v14 = vmul.f32 -1.442695, %v1780_v8 }
0x2785   :  { %2595 = vpow2.f32 %v2057_v14 }
0x278d   :  { %v2594_v11 = vpop.eup %2593 }
0x278e   :  { %1793 = vrot.lane.b32.xlu1 %v2594_v11, %s2639_s0 }
0x278f   :  { %v2596_v16 = vpop.eup %2595 }
0x2790   :  { %v1784_v17 = vadd.f32 1.0, %v2596_v16 }
0x2792   :  { %2597 = vrcp.f32 %v1784_v17 }
0x279c   :  { %v2598_v18 = vpop.eup %2597 }
0x279d   :  { %v1791_v22 = vmul.f32 %v2598_v18, %v1789_v21 }
0x2800   :  { %v1794_v19 = vpop.permute.xlu1 %1793 }
0x2801   :  { %v1796_v20 = vmul.f32 %v2598_v18, %v1794_v19 }
0x2803   :  { %1798 = vrot.lane.b32.xlu0 %v1796_v20, %s2639_s0 }
0x2875   :  { %v1799_v23 = vpop.permute.xlu0 %1798 }
0x2876   :  { %v1801_v24 = vadd.f32 %v1799_v23, %v1791_v22 }
0x2878   :  { %2599 = vtanh.f32 %v1801_v24  ;;  %v1896_v43 = vrot.slane %v1801_v24, 6 }
0x2882   :  { %v2600_v25 = vpop.eup %2599 }
0x2883   :  { %1804 = vrot.lane.b32.xlu1 %v2600_v25, %s2639_s0 }
0x28f5   :  { %v1805_v26 = vpop.permute.xlu1 %1804 }
0x28f6   :  { %v1807_v27 = vmul.f32 %v2598_v18, %v1805_v26 }
0x28f8   :  { %v1809_v12 = vrot.slane %v1807_v27, 4  ;;  %v1919_v29 = vsel %vm971_vm5, %v1918_v28, %v1807_v27 }
0x28fa   :  { %1810 = vrot.lane.b32.xlu0 %v1809_v12, %s2640_s29 }
0x296c   :  { %v1811_v30 = vpop.permute.xlu0 %1810 }
0x296d   :  { %2348 = vmatmul.mubr.msk.f32.vlgmr.msra.gmra.mrb[16].mxu1 %vm126_vm3, %v1811_v30 }
0x2a40   :  { %v1880_v31 = vpop.f32.mrb[16].mxu1 }
0x2a41   :  { %v1885_v32 = vrot.slane %v1880_v31, 2  ;;  %v2349_v33 = vpop.f32.mrb[17].mxu1 }
0x2a43   :  { %v1887_v34 = vadd.f32 %v1885_v32, %v2828_v9 }
0x2a45   :  { %2601 = vtanh.f32 %v1887_v34  ;;  %v2059_v37 = vmul.f32 -1.442695, %v1887_v34 }
0x2a47   :  { %2603 = vpow2.f32 %v2059_v37 }
0x2a4f   :  { %v2602_v36 = vpop.eup %2601 }
0x2a50   :  { %1900 = vrot.lane.b32.xlu1 %v2602_v36, %s2639_s0 }
0x2a51   :  { %v2604_v38 = vpop.eup %2603 }
0x2a52   :  { %v1891_v39 = vadd.f32 1.0, %v2604_v38 }
0x2a54   :  { %2605 = vrcp.f32 %v1891_v39 }
0x2a5e   :  { %v2606_v40 = vpop.eup %2605 }
0x2a5f   :  { %v1898_v44 = vmul.f32 %v2606_v40, %v1896_v43 }
0x2ac2   :  { %v1901_v41 = vpop.permute.xlu1 %1900 }
0x2ac3   :  { %v1903_v42 = vmul.f32 %v2606_v40, %v1901_v41 }
0x2ac5   :  { %1905 = vrot.lane.b32.xlu0 %v1903_v42, %s2639_s0 }
0x2ac9   :  { %1932 = vrot.lane.b32.xlu0 %v2879_v15, %s2640_s29  ;;  %v2465_v15 = vpack.c.bf16 %v1922_v48, %v1921_v47 }
0x2acb   :  { %2466 = vmatprep.subr.bf16.mxu0 %v2465_v15 }
0x2acc   :  { %2468 = vmatpush3.bf16.msra.mxu0 %v2465_v15 }
0x2acd   :  { %2470 = vmatprep.subr.bf16.mxu0 %v2469_v50 }
0x2ad0   :  { %2472 = vmatpush3.bf16.msra.mxu0 %v2469_v50 }
0x2b37   :  { %v1906_v9 = vpop.permute.xlu0 %1905 }
0x2b38   :  { %v1908_v45 = vadd.f32 %v1906_v9, %v1898_v44 }
0x2b3a   :  { %2607 = vtanh.f32 %v1908_v45 }
0x2b3b   :  { %v1933_v46 = vpop.permute.xlu0 %1932 }
0x2b3c   :  { %2358 = vmatprep.mubr.msk.f32.mxu0 %vm126_vm3, %v1933_v46 }
0x2b44   :  { %v2608_v51 = vpop.eup %2607 }
0x2b45   :  { %1911 = vrot.lane.b32.xlu1 %v2608_v51, %s2639_s0 }
0x2bb7   :  { %v1912_v52 = vpop.permute.xlu1 %1911 }
0x2bb8   :  { %v1914_v53 = vmul.f32 %v2606_v40, %v1912_v52 }
0x2bba   :  { %v1920_v54 = vsel %vm973_vm6, %v1919_v29, %v1914_v53 }
0x2bbb   :  { %1934 = vrot.lane.b32.xlu1 %v1920_v54, %s2640_s29 }
0x2c2d   :  { %v1935_v55 = vpop.permute.xlu1 %1934 }
0x2c2e   :  { %2359 = vmatmul.mubr.msk.f32.vlgmr.msra.gmra.mrb[18].mxu0 %vm126_vm3, %v1935_v55 }
0x2d01   :  { %v2360_v57 = vpop.f32.mrb[18].mxu0 }
0x2d02   :  { %v2012_v59 = vadd.f32 %v2360_v57, %v2060_v56  ;;  %v2006_v58 = vpop.f32.mrb[19].mxu0 }
0x2d03   :  { %v2007_v1 = vadd.f32 %v2060_v56, %v2006_v58 }
0x2d04   :  { %2017 = vst.msk [vmem:[%s2951_s3 + $0x8] sm:$0xff] %vm2015_vm7, %v2012_v59 }
0x2d05   :  { %2016 = vst.msk [vmem:[%s2951_s3] sm:$0xff] %vm2015_vm7, %v2007_v1 }
0x2d06   :  { %2022 = vsyncpa [#allocation3], 1 }

</bundles_post_ra>
